<compile_context>
chip_gen: v5e
topology: v5e:2x2
jax: 0.10.0
libtpu: 0.0.40
codegen_flags: <defaults>
</compile_context>

<pallas_src>
import functools

import jax
import jax.numpy as jnp
from jax.experimental import pallas as pl
from jax.experimental.pallas import tpu as pltpu


def _round_up(n, m):
    return ((n + m - 1) // m) * m


def _lstm_kernel(x_ref, w_ih_ref, w_hh_ref, b_ref, w_fc_ref, b_fc_ref,
                 out_ref, xg_sc, *, seq_len, batch_blk):
    """One grid step == one batch block; full time recurrence inside.

    x_ref:    (1, T*Bb, I)   inputs for this batch block, time-major rows
    w_ih_ref: (I, 4*Hp)      W_ih^T, gate planes padded to Hp (matmul dtype)
    w_hh_ref: (Hp, 4*Hp)     W_hh^T, padded                   (matmul dtype)
    b_ref:    (1, 4*Hp)      b_ih + b_hh, padded, f32
    w_fc_ref: (Hp, O)        W_fc^T, padded                   (matmul dtype)
    b_fc_ref: (1, O)         fc bias, f32
    out_ref:  (Bb, O)        prediction for this batch block
    xg_sc:    (T*Bb, 4*Hp)   f32 scratch: precomputed input projections
    """
    Hp = w_hh_ref.shape[0]
    cdt = w_hh_ref.dtype  # matmul operand dtype (f32 or bf16)

    # ---- Phase 1: hoisted input projection (one big MXU matmul), bias folded
    # in once so nothing is re-broadcast inside the recurrence. --------------
    xg_sc[...] = (
        jnp.dot(x_ref[0].astype(cdt), w_ih_ref[...],
                preferred_element_type=jnp.float32)
        + b_ref[...]
    )

    # ---- Phase 2: recurrence. One MXU op per step (h @ W_hh^T); gate
    # nonlinearities / cell state kept in f32 (EUP/VPU friendly on all gens).
    def step(t, carry):
        h, c = carry
        row0 = pl.multiple_of(t * batch_blk, batch_blk)
        gates = xg_sc[pl.ds(row0, batch_blk), :] + jnp.dot(
            h.astype(cdt), w_hh_ref[...], preferred_element_type=jnp.float32)
        # PyTorch gate order: i, f, g, o — each a lane-aligned Hp-wide plane.
        i_g = jax.nn.sigmoid(gates[:, 0 * Hp:1 * Hp])
        f_g = jax.nn.sigmoid(gates[:, 1 * Hp:2 * Hp])
        g_g = jnp.tanh(gates[:, 2 * Hp:3 * Hp])
        o_g = jax.nn.sigmoid(gates[:, 3 * Hp:4 * Hp])
        c_new = f_g * c + i_g * g_g
        h_new = o_g * jnp.tanh(c_new)
        return (h_new, c_new)

    h0 = jnp.zeros((batch_blk, Hp), jnp.float32)
    c0 = jnp.zeros((batch_blk, Hp), jnp.float32)
    h_last, _ = jax.lax.fori_loop(0, seq_len, step, (h0, c0),
                                  unroll=(seq_len <= 32))

    # Final Linear on the last timestep's hidden state.
    out_ref[...] = (
        jnp.dot(h_last.astype(cdt), w_fc_ref[...],
                preferred_element_type=jnp.float32)
        + b_fc_ref[...]
    ).astype(out_ref.dtype)


def lstm_model_forward(x, params, *, matmul_dtype=jnp.float32):
    """x: (B, T, input_size) float32. Returns (B, output_size) float32."""
    B, T, I = x.shape
    w_ih = params["w_ih"]      # (4H, I)
    w_hh = params["w_hh"]      # (4H, H)
    b_ih = params["b_ih"]      # (4H,)
    b_hh = params["b_hh"]      # (4H,)
    w_fc = params["w_fc"]      # (O, H)
    b_fc = params["b_fc"]      # (O,)
    H = w_hh.shape[1]
    O = w_fc.shape[0]
    f32 = jnp.float32
    cdt = jnp.dtype(matmul_dtype)

    # ---- TPU-friendly (mathematically exact) zero-padding --------------------
    Hp = _round_up(H, 128)          # lane-aligned gate planes / MXU K width
    Bp = _round_up(B, 8)            # sublane-aligned batch
    Bb = 128 if Bp >= 128 else Bp   # batch tile (grid axis -> parallel cores)
    Bp = _round_up(Bp, Bb)
    nb = Bp // Bb

    # W_ih^T: (I, 4H) -> per-gate planes padded to Hp -> (I, 4*Hp)
    w_ih_t = w_ih.astype(f32).T.reshape(I, 4, H)
    w_ih_t = jnp.pad(w_ih_t, ((0, 0), (0, 0), (0, Hp - H))).reshape(I, 4 * Hp)
    # W_hh^T: (H, 4H) -> (Hp, 4*Hp); padded hidden units get zero rows/cols
    w_hh_t = w_hh.astype(f32).T.reshape(H, 4, H)
    w_hh_t = jnp.pad(w_hh_t, ((0, Hp - H), (0, 0), (0, Hp - H))).reshape(Hp, 4 * Hp)
    # Combined bias, folded once into the input projection.
    b = (b_ih + b_hh).astype(f32).reshape(4, H)
    b = jnp.pad(b, ((0, 0), (0, Hp - H))).reshape(1, 4 * Hp)
    # W_fc^T: (H, O) -> (Hp, O); padded hidden rows are zero.
    w_fc_t = jnp.pad(w_fc.astype(f32).T, ((0, Hp - H), (0, 0)))
    b_fc2 = b_fc.astype(f32).reshape(1, O)

    # Matmul operands in bf16 (v6e/v7x) or f32; state/gate math stays f32.
    w_ih_t = w_ih_t.astype(cdt)
    w_hh_t = w_hh_t.astype(cdt)
    w_fc_t = w_fc_t.astype(cdt)

    # x: (B, T, I) -> pad batch -> (nb, T*Bb, I), time-major rows per block.
    xp = jnp.pad(x.astype(f32), ((0, Bp - B), (0, 0), (0, 0)))
    xp = xp.reshape(nb, Bb, T, I).transpose(0, 2, 1, 3).reshape(nb, T * Bb, I)

    kernel = functools.partial(_lstm_kernel, seq_len=T, batch_blk=Bb)

    # TODO(synk): for very long T, tile the time axis (chunked xg scratch /
    # pltpu.emit_pipeline) and single-buffer the weight inputs for v7x's
    # 64 MiB VMEM at production H.
    out_p = pl.pallas_call(
        kernel,
        out_shape=jax.ShapeDtypeStruct((Bp, O), jnp.float32),
        grid_spec=pltpu.PrefetchScalarGridSpec(
            num_scalar_prefetch=0,
            grid=(nb,),
            in_specs=[
                pl.BlockSpec((1, T * Bb, I), lambda i: (i, 0, 0)),   # x block
                pl.BlockSpec((I, 4 * Hp), lambda i: (0, 0)),         # W_ih^T
                pl.BlockSpec((Hp, 4 * Hp), lambda i: (0, 0)),        # W_hh^T
                pl.BlockSpec((1, 4 * Hp), lambda i: (0, 0)),         # bias
                pl.BlockSpec((Hp, O), lambda i: (0, 0)),             # W_fc^T
                pl.BlockSpec((1, O), lambda i: (0, 0)),              # b_fc
            ],
            out_specs=pl.BlockSpec((Bb, O), lambda i: (i, 0)),
            scratch_shapes=[
                pltpu.VMEM((T * Bb, 4 * Hp), jnp.float32),   # hoisted X@W_ih^T
            ],
        ),
        compiler_params=pltpu.CompilerParams(
            dimension_semantics=("parallel",),
            vmem_limit_bytes=32 * 1024 * 1024,
        ),
    )(xp, w_ih_t, w_hh_t, b, w_fc_t, b_fc2)

    return out_p[:B]


def lstm_model_reference(x, params):
    """Pure-JAX reference mirroring PyTorch nn.LSTM + Linear semantics."""
    B, T, I = x.shape
    H = params["w_hh"].shape[1]
    w_ih_t = params["w_ih"].T
    w_hh_t = params["w_hh"].T
    b = params["b_ih"] + params["b_hh"]

    def step(carry, x_t):
        h, c = carry
        gates = x_t @ w_ih_t + h @ w_hh_t + b
        i = jax.nn.sigmoid(gates[:, 0 * H:1 * H])
        f = jax.nn.sigmoid(gates[:, 1 * H:2 * H])
        g = jnp.tanh(gates[:, 2 * H:3 * H])
        o = jax.nn.sigmoid(gates[:, 3 * H:4 * H])
        c = f * c + i * g
        h = o * jnp.tanh(c)
        return (h, c), None

    h0 = jnp.zeros((B, H), jnp.float32)
    c0 = jnp.zeros((B, H), jnp.float32)
    (h_last, _), _ = jax.lax.scan(step, (h0, c0), jnp.transpose(x, (1, 0, 2)))
    return h_last @ params["w_fc"].T + params["b_fc"]


def init_params(key, input_size, hidden_size, output_size):
    """Deterministic init matching PyTorch parameter shapes (U(-k, k), k=1/sqrt(H))."""
    k = 1.0 / jnp.sqrt(jnp.float32(hidden_size))
    keys = jax.random.split(key, 6)
    u = lambda kk, shape: jax.random.uniform(kk, shape, jnp.float32, -k, k)
    return {
        "w_ih": u(keys[0], (4 * hidden_size, input_size)),
        "w_hh": u(keys[1], (4 * hidden_size, hidden_size)),
        "b_ih": u(keys[2], (4 * hidden_size,)),
        "b_hh": u(keys[3], (4 * hidden_size,)),
        "w_fc": u(keys[4], (output_size, hidden_size)),
        "b_fc": u(keys[5], (output_size,)),
    }


if __name__ == "__main__":
    B, T, INPUT_SIZE, HIDDEN_SIZE, OUTPUT_SIZE = 2, 8, 4, 32, 1

    key = jax.random.PRNGKey(0)
    kx, kp = jax.random.split(key)
    x = jax.random.normal(kx, (B, T, INPUT_SIZE), jnp.float32)
    params = init_params(kp, INPUT_SIZE, HIDDEN_SIZE, OUTPUT_SIZE)

    ref = lstm_model_reference(x, params)

    # f32 matmul operands: exact-path correctness check.
    out = jax.block_until_ready(lstm_model_forward(x, params))
    assert out.shape == (B, OUTPUT_SIZE)
    assert jnp.allclose(out, ref, atol=1e-4, rtol=1e-4), (out, ref)

    # bf16 matmul operands (v6e/v7x MXU-native path), f32 accumulation/state.
    out_bf16 = jax.block_until_ready(
        lstm_model_forward(x, params, matmul_dtype=jnp.bfloat16))
    assert out_bf16.shape == (B, OUTPUT_SIZE)
    assert jnp.allclose(out_bf16, ref, atol=1e-1, rtol=1e-1), (out_bf16, ref)

    print("KERNEL_OK")
</pallas_src>

<mosaic_0001>
module attributes {stable_mosaic.version = 11 : i64} {
  func.func @_lstm_kernel(%arg0: i32, %arg1: memref<1x64x4xf32, #tpu.memory_space<vmem>>, %arg2: memref<4x512xf32, #tpu.memory_space<vmem>>, %arg3: memref<128x512xf32, #tpu.memory_space<vmem>>, %arg4: memref<1x512xf32, #tpu.memory_space<vmem>>, %arg5: memref<128x1xf32, #tpu.memory_space<vmem>>, %arg6: memref<1x1xf32, #tpu.memory_space<vmem>>, %arg7: memref<8x1xf32, #tpu.memory_space<vmem>>, %arg8: memref<64x512xf32, #tpu.memory_space<vmem>>) attributes {dimension_semantics = [#tpu.dimension_semantics<parallel>], iteration_bounds = array<i64: 1>, scalar_prefetch = 0 : i64, scratch_operands = 1 : i64, tpu.core_type = #tpu.core_type<tc>, window_params = [{transform_indices = @transform_0, window_bounds = array<i64: 1, 64, 4>}, {pipeline_mode = #tpu.pipeline_mode<synchronous>, transform_indices = @transform_1, window_bounds = array<i64: 4, 512>}, {pipeline_mode = #tpu.pipeline_mode<synchronous>, transform_indices = @transform_2, window_bounds = array<i64: 128, 512>}, {pipeline_mode = #tpu.pipeline_mode<synchronous>, transform_indices = @transform_3, window_bounds = array<i64: 1, 512>}, {pipeline_mode = #tpu.pipeline_mode<synchronous>, transform_indices = @transform_4, window_bounds = array<i64: 128, 1>}, {pipeline_mode = #tpu.pipeline_mode<synchronous>, transform_indices = @transform_5, window_bounds = array<i64: 1, 1>}, {transform_indices = @transform_6, window_bounds = array<i64: 8, 1>}]} {
    %c0 = arith.constant 0 : index
    %c0_0 = arith.constant 0 : index
    %c0_1 = arith.constant 0 : index
    %0 = vector.load %arg1[%c0, %c0_0, %c0_1] : memref<1x64x4xf32, #tpu.memory_space<vmem>>, vector<1x64x4xf32>
    %1 = vector.shape_cast %0 : vector<1x64x4xf32> to vector<64x4xf32>
    %c0_2 = arith.constant 0 : index
    %c0_3 = arith.constant 0 : index
    %2 = vector.load %arg2[%c0_2, %c0_3] : memref<4x512xf32, #tpu.memory_space<vmem>>, vector<4x512xf32>
    %cst = arith.constant dense<0.000000e+00> : vector<64x512xf32>
    %3 = tpu.matmul %1, %2, %cst {dimension_numbers = #tpu.dot_dimension_numbers<[1], [0], [0], [1], [0, 0, 1, 1], [], []>} : vector<64x4xf32>, vector<4x512xf32>, vector<64x512xf32> -> vector<64x512xf32>
    %c0_4 = arith.constant 0 : index
    %c0_5 = arith.constant 0 : index
    %4 = vector.load %arg4[%c0_4, %c0_5] : memref<1x512xf32, #tpu.memory_space<vmem>>, vector<1x512xf32>
    %5 = vector.broadcast %4 : vector<1x512xf32> to vector<64x512xf32>
    %6 = arith.addf %3, %5 : vector<64x512xf32>
    %c0_6 = arith.constant 0 : index
    %c0_7 = arith.constant 0 : index
    %7 = vector.load %arg8[%c0_6, %c0_7] : memref<64x512xf32, #tpu.memory_space<vmem>>, vector<64x512xf32>
    tpu.vector_store %arg8[%c0_6, %c0_7], %6 {strides = array<i32>} : memref<64x512xf32, #tpu.memory_space<vmem>>, vector<64x512xf32>,
    %cst_8 = arith.constant 0.000000e+00 : f32
    %8 = vector.broadcast %cst_8 : f32 to vector<8x128xf32>
    %cst_9 = arith.constant 0.000000e+00 : f32
    %9 = vector.broadcast %cst_9 : f32 to vector<8x128xf32>
    %c0_i32 = arith.constant 0 : i32
    %c8_i32 = arith.constant 8 : i32
    %10 = arith.muli %c0_i32, %c8_i32 : i32
    %11 = tpu.assume_multiple %10, 8 : i32
    %12 = arith.index_cast %11 : i32 to index
    %c0_10 = arith.constant 0 : index
    %13 = vector.load %arg8[%12, %c0_10] : memref<64x512xf32, #tpu.memory_space<vmem>>, vector<8x512xf32>
    %c0_11 = arith.constant 0 : index
    %c0_12 = arith.constant 0 : index
    %14 = vector.load %arg3[%c0_11, %c0_12] : memref<128x512xf32, #tpu.memory_space<vmem>>, vector<128x512xf32>
    %cst_13 = arith.constant dense<0.000000e+00> : vector<8x512xf32>
    %15 = tpu.matmul %8, %14, %cst_13 {dimension_numbers = #tpu.dot_dimension_numbers<[1], [0], [0], [1], [0, 0, 1, 1], [], []>} : vector<8x128xf32>, vector<128x512xf32>, vector<8x512xf32> -> vector<8x512xf32>
    %16 = arith.addf %13, %15 : vector<8x512xf32>
    %17 = vector.extract_strided_slice %16 {offsets = [0, 0], sizes = [8, 128], strides = [1, 1]} : vector<8x512xf32> to vector<8x128xf32>
    %18 = arith.negf %17 : vector<8x128xf32>
    %19 = math.exp %18 : vector<8x128xf32>
    %cst_14 = arith.constant 1.000000e+00 : f32
    %20 = vector.broadcast %cst_14 : f32 to vector<8x128xf32>
    %21 = arith.addf %20, %19 : vector<8x128xf32>
    %22 = arith.divf %20, %21 : vector<8x128xf32>
    %23 = vector.extract_strided_slice %16 {offsets = [0, 128], sizes = [8, 128], strides = [1, 1]} : vector<8x512xf32> to vector<8x128xf32>
    %24 = arith.negf %23 : vector<8x128xf32>
    %25 = math.exp %24 : vector<8x128xf32>
    %cst_15 = arith.constant 1.000000e+00 : f32
    %26 = vector.broadcast %cst_15 : f32 to vector<8x128xf32>
    %27 = arith.addf %26, %25 : vector<8x128xf32>
    %28 = arith.divf %26, %27 : vector<8x128xf32>
    %29 = vector.extract_strided_slice %16 {offsets = [0, 256], sizes = [8, 128], strides = [1, 1]} : vector<8x512xf32> to vector<8x128xf32>
    %30 = math.tanh %29 : vector<8x128xf32>
    %31 = vector.extract_strided_slice %16 {offsets = [0, 384], sizes = [8, 128], strides = [1, 1]} : vector<8x512xf32> to vector<8x128xf32>
    %32 = arith.negf %31 : vector<8x128xf32>
    %33 = math.exp %32 : vector<8x128xf32>
    %cst_16 = arith.constant 1.000000e+00 : f32
    %34 = vector.broadcast %cst_16 : f32 to vector<8x128xf32>
    %35 = arith.addf %34, %33 : vector<8x128xf32>
    %36 = arith.divf %34, %35 : vector<8x128xf32>
    %37 = arith.mulf %28, %9 : vector<8x128xf32>
    %38 = arith.mulf %22, %30 : vector<8x128xf32>
    %39 = arith.addf %37, %38 : vector<8x128xf32>
    %40 = math.tanh %39 : vector<8x128xf32>
    %41 = arith.mulf %36, %40 : vector<8x128xf32>
    %c1_i32 = arith.constant 1 : i32
    %c8_i32_17 = arith.constant 8 : i32
    %42 = arith.muli %c1_i32, %c8_i32_17 : i32
    %43 = tpu.assume_multiple %42, 8 : i32
    %44 = arith.index_cast %43 : i32 to index
    %c0_18 = arith.constant 0 : index
    %45 = vector.load %arg8[%44, %c0_18] : memref<64x512xf32, #tpu.memory_space<vmem>>, vector<8x512xf32>
    %c0_19 = arith.constant 0 : index
    %c0_20 = arith.constant 0 : index
    %46 = vector.load %arg3[%c0_19, %c0_20] : memref<128x512xf32, #tpu.memory_space<vmem>>, vector<128x512xf32>
    %cst_21 = arith.constant dense<0.000000e+00> : vector<8x512xf32>
    %47 = tpu.matmul %41, %46, %cst_21 {dimension_numbers = #tpu.dot_dimension_numbers<[1], [0], [0], [1], [0, 0, 1, 1], [], []>} : vector<8x128xf32>, vector<128x512xf32>, vector<8x512xf32> -> vector<8x512xf32>
    %48 = arith.addf %45, %47 : vector<8x512xf32>
    %49 = vector.extract_strided_slice %48 {offsets = [0, 0], sizes = [8, 128], strides = [1, 1]} : vector<8x512xf32> to vector<8x128xf32>
    %50 = arith.negf %49 : vector<8x128xf32>
    %51 = math.exp %50 : vector<8x128xf32>
    %cst_22 = arith.constant 1.000000e+00 : f32
    %52 = vector.broadcast %cst_22 : f32 to vector<8x128xf32>
    %53 = arith.addf %52, %51 : vector<8x128xf32>
    %54 = arith.divf %52, %53 : vector<8x128xf32>
    %55 = vector.extract_strided_slice %48 {offsets = [0, 128], sizes = [8, 128], strides = [1, 1]} : vector<8x512xf32> to vector<8x128xf32>
    %56 = arith.negf %55 : vector<8x128xf32>
    %57 = math.exp %56 : vector<8x128xf32>
    %cst_23 = arith.constant 1.000000e+00 : f32
    %58 = vector.broadcast %cst_23 : f32 to vector<8x128xf32>
    %59 = arith.addf %58, %57 : vector<8x128xf32>
    %60 = arith.divf %58, %59 : vector<8x128xf32>
    %61 = vector.extract_strided_slice %48 {offsets = [0, 256], sizes = [8, 128], strides = [1, 1]} : vector<8x512xf32> to vector<8x128xf32>
    %62 = math.tanh %61 : vector<8x128xf32>
    %63 = vector.extract_strided_slice %48 {offsets = [0, 384], sizes = [8, 128], strides = [1, 1]} : vector<8x512xf32> to vector<8x128xf32>
    %64 = arith.negf %63 : vector<8x128xf32>
    %65 = math.exp %64 : vector<8x128xf32>
    %cst_24 = arith.constant 1.000000e+00 : f32
    %66 = vector.broadcast %cst_24 : f32 to vector<8x128xf32>
    %67 = arith.addf %66, %65 : vector<8x128xf32>
    %68 = arith.divf %66, %67 : vector<8x128xf32>
    %69 = arith.mulf %60, %39 : vector<8x128xf32>
    %70 = arith.mulf %54, %62 : vector<8x128xf32>
    %71 = arith.addf %69, %70 : vector<8x128xf32>
    %72 = math.tanh %71 : vector<8x128xf32>
    %73 = arith.mulf %68, %72 : vector<8x128xf32>
    %c2_i32 = arith.constant 2 : i32
    %c8_i32_25 = arith.constant 8 : i32
    %74 = arith.muli %c2_i32, %c8_i32_25 : i32
    %75 = tpu.assume_multiple %74, 8 : i32
    %76 = arith.index_cast %75 : i32 to index
    %c0_26 = arith.constant 0 : index
    %77 = vector.load %arg8[%76, %c0_26] : memref<64x512xf32, #tpu.memory_space<vmem>>, vector<8x512xf32>
    %c0_27 = arith.constant 0 : index
    %c0_28 = arith.constant 0 : index
    %78 = vector.load %arg3[%c0_27, %c0_28] : memref<128x512xf32, #tpu.memory_space<vmem>>, vector<128x512xf32>
    %cst_29 = arith.constant dense<0.000000e+00> : vector<8x512xf32>
    %79 = tpu.matmul %73, %78, %cst_29 {dimension_numbers = #tpu.dot_dimension_numbers<[1], [0], [0], [1], [0, 0, 1, 1], [], []>} : vector<8x128xf32>, vector<128x512xf32>, vector<8x512xf32> -> vector<8x512xf32>
    %80 = arith.addf %77, %79 : vector<8x512xf32>
    %81 = vector.extract_strided_slice %80 {offsets = [0, 0], sizes = [8, 128], strides = [1, 1]} : vector<8x512xf32> to vector<8x128xf32>
    %82 = arith.negf %81 : vector<8x128xf32>
    %83 = math.exp %82 : vector<8x128xf32>
    %cst_30 = arith.constant 1.000000e+00 : f32
    %84 = vector.broadcast %cst_30 : f32 to vector<8x128xf32>
    %85 = arith.addf %84, %83 : vector<8x128xf32>
    %86 = arith.divf %84, %85 : vector<8x128xf32>
    %87 = vector.extract_strided_slice %80 {offsets = [0, 128], sizes = [8, 128], strides = [1, 1]} : vector<8x512xf32> to vector<8x128xf32>
    %88 = arith.negf %87 : vector<8x128xf32>
    %89 = math.exp %88 : vector<8x128xf32>
    %cst_31 = arith.constant 1.000000e+00 : f32
    %90 = vector.broadcast %cst_31 : f32 to vector<8x128xf32>
    %91 = arith.addf %90, %89 : vector<8x128xf32>
    %92 = arith.divf %90, %91 : vector<8x128xf32>
    %93 = vector.extract_strided_slice %80 {offsets = [0, 256], sizes = [8, 128], strides = [1, 1]} : vector<8x512xf32> to vector<8x128xf32>
    %94 = math.tanh %93 : vector<8x128xf32>
    %95 = vector.extract_strided_slice %80 {offsets = [0, 384], sizes = [8, 128], strides = [1, 1]} : vector<8x512xf32> to vector<8x128xf32>
    %96 = arith.negf %95 : vector<8x128xf32>
    %97 = math.exp %96 : vector<8x128xf32>
    %cst_32 = arith.constant 1.000000e+00 : f32
    %98 = vector.broadcast %cst_32 : f32 to vector<8x128xf32>
    %99 = arith.addf %98, %97 : vector<8x128xf32>
    %100 = arith.divf %98, %99 : vector<8x128xf32>
    %101 = arith.mulf %92, %71 : vector<8x128xf32>
    %102 = arith.mulf %86, %94 : vector<8x128xf32>
    %103 = arith.addf %101, %102 : vector<8x128xf32>
    %104 = math.tanh %103 : vector<8x128xf32>
    %105 = arith.mulf %100, %104 : vector<8x128xf32>
    %c3_i32 = arith.constant 3 : i32
    %c8_i32_33 = arith.constant 8 : i32
    %106 = arith.muli %c3_i32, %c8_i32_33 : i32
    %107 = tpu.assume_multiple %106, 8 : i32
    %108 = arith.index_cast %107 : i32 to index
    %c0_34 = arith.constant 0 : index
    %109 = vector.load %arg8[%108, %c0_34] : memref<64x512xf32, #tpu.memory_space<vmem>>, vector<8x512xf32>
    %c0_35 = arith.constant 0 : index
    %c0_36 = arith.constant 0 : index
    %110 = vector.load %arg3[%c0_35, %c0_36] : memref<128x512xf32, #tpu.memory_space<vmem>>, vector<128x512xf32>
    %cst_37 = arith.constant dense<0.000000e+00> : vector<8x512xf32>
    %111 = tpu.matmul %105, %110, %cst_37 {dimension_numbers = #tpu.dot_dimension_numbers<[1], [0], [0], [1], [0, 0, 1, 1], [], []>} : vector<8x128xf32>, vector<128x512xf32>, vector<8x512xf32> -> vector<8x512xf32>
    %112 = arith.addf %109, %111 : vector<8x512xf32>
    %113 = vector.extract_strided_slice %112 {offsets = [0, 0], sizes = [8, 128], strides = [1, 1]} : vector<8x512xf32> to vector<8x128xf32>
    %114 = arith.negf %113 : vector<8x128xf32>
    %115 = math.exp %114 : vector<8x128xf32>
    %cst_38 = arith.constant 1.000000e+00 : f32
    %116 = vector.broadcast %cst_38 : f32 to vector<8x128xf32>
    %117 = arith.addf %116, %115 : vector<8x128xf32>
    %118 = arith.divf %116, %117 : vector<8x128xf32>
    %119 = vector.extract_strided_slice %112 {offsets = [0, 128], sizes = [8, 128], strides = [1, 1]} : vector<8x512xf32> to vector<8x128xf32>
    %120 = arith.negf %119 : vector<8x128xf32>
    %121 = math.exp %120 : vector<8x128xf32>
    %cst_39 = arith.constant 1.000000e+00 : f32
    %122 = vector.broadcast %cst_39 : f32 to vector<8x128xf32>
    %123 = arith.addf %122, %121 : vector<8x128xf32>
    %124 = arith.divf %122, %123 : vector<8x128xf32>
    %125 = vector.extract_strided_slice %112 {offsets = [0, 256], sizes = [8, 128], strides = [1, 1]} : vector<8x512xf32> to vector<8x128xf32>
    %126 = math.tanh %125 : vector<8x128xf32>
    %127 = vector.extract_strided_slice %112 {offsets = [0, 384], sizes = [8, 128], strides = [1, 1]} : vector<8x512xf32> to vector<8x128xf32>
    %128 = arith.negf %127 : vector<8x128xf32>
    %129 = math.exp %128 : vector<8x128xf32>
    %cst_40 = arith.constant 1.000000e+00 : f32
    %130 = vector.broadcast %cst_40 : f32 to vector<8x128xf32>
    %131 = arith.addf %130, %129 : vector<8x128xf32>
    %132 = arith.divf %130, %131 : vector<8x128xf32>
    %133 = arith.mulf %124, %103 : vector<8x128xf32>
    %134 = arith.mulf %118, %126 : vector<8x128xf32>
    %135 = arith.addf %133, %134 : vector<8x128xf32>
    %136 = math.tanh %135 : vector<8x128xf32>
    %137 = arith.mulf %132, %136 : vector<8x128xf32>
    %c4_i32 = arith.constant 4 : i32
    %c8_i32_41 = arith.constant 8 : i32
    %138 = arith.muli %c4_i32, %c8_i32_41 : i32
    %139 = tpu.assume_multiple %138, 8 : i32
    %140 = arith.index_cast %139 : i32 to index
    %c0_42 = arith.constant 0 : index
    %141 = vector.load %arg8[%140, %c0_42] : memref<64x512xf32, #tpu.memory_space<vmem>>, vector<8x512xf32>
    %c0_43 = arith.constant 0 : index
    %c0_44 = arith.constant 0 : index
    %142 = vector.load %arg3[%c0_43, %c0_44] : memref<128x512xf32, #tpu.memory_space<vmem>>, vector<128x512xf32>
    %cst_45 = arith.constant dense<0.000000e+00> : vector<8x512xf32>
    %143 = tpu.matmul %137, %142, %cst_45 {dimension_numbers = #tpu.dot_dimension_numbers<[1], [0], [0], [1], [0, 0, 1, 1], [], []>} : vector<8x128xf32>, vector<128x512xf32>, vector<8x512xf32> -> vector<8x512xf32>
    %144 = arith.addf %141, %143 : vector<8x512xf32>
    %145 = vector.extract_strided_slice %144 {offsets = [0, 0], sizes = [8, 128], strides = [1, 1]} : vector<8x512xf32> to vector<8x128xf32>
    %146 = arith.negf %145 : vector<8x128xf32>
    %147 = math.exp %146 : vector<8x128xf32>
    %cst_46 = arith.constant 1.000000e+00 : f32
    %148 = vector.broadcast %cst_46 : f32 to vector<8x128xf32>
    %149 = arith.addf %148, %147 : vector<8x128xf32>
    %150 = arith.divf %148, %149 : vector<8x128xf32>
    %151 = vector.extract_strided_slice %144 {offsets = [0, 128], sizes = [8, 128], strides = [1, 1]} : vector<8x512xf32> to vector<8x128xf32>
    %152 = arith.negf %151 : vector<8x128xf32>
    %153 = math.exp %152 : vector<8x128xf32>
    %cst_47 = arith.constant 1.000000e+00 : f32
    %154 = vector.broadcast %cst_47 : f32 to vector<8x128xf32>
    %155 = arith.addf %154, %153 : vector<8x128xf32>
    %156 = arith.divf %154, %155 : vector<8x128xf32>
    %157 = vector.extract_strided_slice %144 {offsets = [0, 256], sizes = [8, 128], strides = [1, 1]} : vector<8x512xf32> to vector<8x128xf32>
    %158 = math.tanh %157 : vector<8x128xf32>
    %159 = vector.extract_strided_slice %144 {offsets = [0, 384], sizes = [8, 128], strides = [1, 1]} : vector<8x512xf32> to vector<8x128xf32>
    %160 = arith.negf %159 : vector<8x128xf32>
    %161 = math.exp %160 : vector<8x128xf32>
    %cst_48 = arith.constant 1.000000e+00 : f32
    %162 = vector.broadcast %cst_48 : f32 to vector<8x128xf32>
    %163 = arith.addf %162, %161 : vector<8x128xf32>
    %164 = arith.divf %162, %163 : vector<8x128xf32>
    %165 = arith.mulf %156, %135 : vector<8x128xf32>
    %166 = arith.mulf %150, %158 : vector<8x128xf32>
    %167 = arith.addf %165, %166 : vector<8x128xf32>
    %168 = math.tanh %167 : vector<8x128xf32>
    %169 = arith.mulf %164, %168 : vector<8x128xf32>
    %c5_i32 = arith.constant 5 : i32
    %c8_i32_49 = arith.constant 8 : i32
    %170 = arith.muli %c5_i32, %c8_i32_49 : i32
    %171 = tpu.assume_multiple %170, 8 : i32
    %172 = arith.index_cast %171 : i32 to index
    %c0_50 = arith.constant 0 : index
    %173 = vector.load %arg8[%172, %c0_50] : memref<64x512xf32, #tpu.memory_space<vmem>>, vector<8x512xf32>
    %c0_51 = arith.constant 0 : index
    %c0_52 = arith.constant 0 : index
    %174 = vector.load %arg3[%c0_51, %c0_52] : memref<128x512xf32, #tpu.memory_space<vmem>>, vector<128x512xf32>
    %cst_53 = arith.constant dense<0.000000e+00> : vector<8x512xf32>
    %175 = tpu.matmul %169, %174, %cst_53 {dimension_numbers = #tpu.dot_dimension_numbers<[1], [0], [0], [1], [0, 0, 1, 1], [], []>} : vector<8x128xf32>, vector<128x512xf32>, vector<8x512xf32> -> vector<8x512xf32>
    %176 = arith.addf %173, %175 : vector<8x512xf32>
    %177 = vector.extract_strided_slice %176 {offsets = [0, 0], sizes = [8, 128], strides = [1, 1]} : vector<8x512xf32> to vector<8x128xf32>
    %178 = arith.negf %177 : vector<8x128xf32>
    %179 = math.exp %178 : vector<8x128xf32>
    %cst_54 = arith.constant 1.000000e+00 : f32
    %180 = vector.broadcast %cst_54 : f32 to vector<8x128xf32>
    %181 = arith.addf %180, %179 : vector<8x128xf32>
    %182 = arith.divf %180, %181 : vector<8x128xf32>
    %183 = vector.extract_strided_slice %176 {offsets = [0, 128], sizes = [8, 128], strides = [1, 1]} : vector<8x512xf32> to vector<8x128xf32>
    %184 = arith.negf %183 : vector<8x128xf32>
    %185 = math.exp %184 : vector<8x128xf32>
    %cst_55 = arith.constant 1.000000e+00 : f32
    %186 = vector.broadcast %cst_55 : f32 to vector<8x128xf32>
    %187 = arith.addf %186, %185 : vector<8x128xf32>
    %188 = arith.divf %186, %187 : vector<8x128xf32>
    %189 = vector.extract_strided_slice %176 {offsets = [0, 256], sizes = [8, 128], strides = [1, 1]} : vector<8x512xf32> to vector<8x128xf32>
    %190 = math.tanh %189 : vector<8x128xf32>
    %191 = vector.extract_strided_slice %176 {offsets = [0, 384], sizes = [8, 128], strides = [1, 1]} : vector<8x512xf32> to vector<8x128xf32>
    %192 = arith.negf %191 : vector<8x128xf32>
    %193 = math.exp %192 : vector<8x128xf32>
    %cst_56 = arith.constant 1.000000e+00 : f32
    %194 = vector.broadcast %cst_56 : f32 to vector<8x128xf32>
    %195 = arith.addf %194, %193 : vector<8x128xf32>
    %196 = arith.divf %194, %195 : vector<8x128xf32>
    %197 = arith.mulf %188, %167 : vector<8x128xf32>
    %198 = arith.mulf %182, %190 : vector<8x128xf32>
    %199 = arith.addf %197, %198 : vector<8x128xf32>
    %200 = math.tanh %199 : vector<8x128xf32>
    %201 = arith.mulf %196, %200 : vector<8x128xf32>
    %c6_i32 = arith.constant 6 : i32
    %c8_i32_57 = arith.constant 8 : i32
    %202 = arith.muli %c6_i32, %c8_i32_57 : i32
    %203 = tpu.assume_multiple %202, 8 : i32
    %204 = arith.index_cast %203 : i32 to index
    %c0_58 = arith.constant 0 : index
    %205 = vector.load %arg8[%204, %c0_58] : memref<64x512xf32, #tpu.memory_space<vmem>>, vector<8x512xf32>
    %c0_59 = arith.constant 0 : index
    %c0_60 = arith.constant 0 : index
    %206 = vector.load %arg3[%c0_59, %c0_60] : memref<128x512xf32, #tpu.memory_space<vmem>>, vector<128x512xf32>
    %cst_61 = arith.constant dense<0.000000e+00> : vector<8x512xf32>
    %207 = tpu.matmul %201, %206, %cst_61 {dimension_numbers = #tpu.dot_dimension_numbers<[1], [0], [0], [1], [0, 0, 1, 1], [], []>} : vector<8x128xf32>, vector<128x512xf32>, vector<8x512xf32> -> vector<8x512xf32>
    %208 = arith.addf %205, %207 : vector<8x512xf32>
    %209 = vector.extract_strided_slice %208 {offsets = [0, 0], sizes = [8, 128], strides = [1, 1]} : vector<8x512xf32> to vector<8x128xf32>
    %210 = arith.negf %209 : vector<8x128xf32>
    %211 = math.exp %210 : vector<8x128xf32>
    %cst_62 = arith.constant 1.000000e+00 : f32
    %212 = vector.broadcast %cst_62 : f32 to vector<8x128xf32>
    %213 = arith.addf %212, %211 : vector<8x128xf32>
    %214 = arith.divf %212, %213 : vector<8x128xf32>
    %215 = vector.extract_strided_slice %208 {offsets = [0, 128], sizes = [8, 128], strides = [1, 1]} : vector<8x512xf32> to vector<8x128xf32>
    %216 = arith.negf %215 : vector<8x128xf32>
    %217 = math.exp %216 : vector<8x128xf32>
    %cst_63 = arith.constant 1.000000e+00 : f32
    %218 = vector.broadcast %cst_63 : f32 to vector<8x128xf32>
    %219 = arith.addf %218, %217 : vector<8x128xf32>
    %220 = arith.divf %218, %219 : vector<8x128xf32>
    %221 = vector.extract_strided_slice %208 {offsets = [0, 256], sizes = [8, 128], strides = [1, 1]} : vector<8x512xf32> to vector<8x128xf32>
    %222 = math.tanh %221 : vector<8x128xf32>
    %223 = vector.extract_strided_slice %208 {offsets = [0, 384], sizes = [8, 128], strides = [1, 1]} : vector<8x512xf32> to vector<8x128xf32>
    %224 = arith.negf %223 : vector<8x128xf32>
    %225 = math.exp %224 : vector<8x128xf32>
    %cst_64 = arith.constant 1.000000e+00 : f32
    %226 = vector.broadcast %cst_64 : f32 to vector<8x128xf32>
    %227 = arith.addf %226, %225 : vector<8x128xf32>
    %228 = arith.divf %226, %227 : vector<8x128xf32>
    %229 = arith.mulf %220, %199 : vector<8x128xf32>
    %230 = arith.mulf %214, %222 : vector<8x128xf32>
    %231 = arith.addf %229, %230 : vector<8x128xf32>
    %232 = math.tanh %231 : vector<8x128xf32>
    %233 = arith.mulf %228, %232 : vector<8x128xf32>
    %c7_i32 = arith.constant 7 : i32
    %c8_i32_65 = arith.constant 8 : i32
    %234 = arith.muli %c7_i32, %c8_i32_65 : i32
    %235 = tpu.assume_multiple %234, 8 : i32
    %236 = arith.index_cast %235 : i32 to index
    %c0_66 = arith.constant 0 : index
    %237 = vector.load %arg8[%236, %c0_66] : memref<64x512xf32, #tpu.memory_space<vmem>>, vector<8x512xf32>
    %c0_67 = arith.constant 0 : index
    %c0_68 = arith.constant 0 : index
    %238 = vector.load %arg3[%c0_67, %c0_68] : memref<128x512xf32, #tpu.memory_space<vmem>>, vector<128x512xf32>
    %cst_69 = arith.constant dense<0.000000e+00> : vector<8x512xf32>
    %239 = tpu.matmul %233, %238, %cst_69 {dimension_numbers = #tpu.dot_dimension_numbers<[1], [0], [0], [1], [0, 0, 1, 1], [], []>} : vector<8x128xf32>, vector<128x512xf32>, vector<8x512xf32> -> vector<8x512xf32>
    %240 = arith.addf %237, %239 : vector<8x512xf32>
    %241 = vector.extract_strided_slice %240 {offsets = [0, 0], sizes = [8, 128], strides = [1, 1]} : vector<8x512xf32> to vector<8x128xf32>
    %242 = arith.negf %241 : vector<8x128xf32>
    %243 = math.exp %242 : vector<8x128xf32>
    %cst_70 = arith.constant 1.000000e+00 : f32
    %244 = vector.broadcast %cst_70 : f32 to vector<8x128xf32>
    %245 = arith.addf %244, %243 : vector<8x128xf32>
    %246 = arith.divf %244, %245 : vector<8x128xf32>
    %247 = vector.extract_strided_slice %240 {offsets = [0, 128], sizes = [8, 128], strides = [1, 1]} : vector<8x512xf32> to vector<8x128xf32>
    %248 = arith.negf %247 : vector<8x128xf32>
    %249 = math.exp %248 : vector<8x128xf32>
    %cst_71 = arith.constant 1.000000e+00 : f32
    %250 = vector.broadcast %cst_71 : f32 to vector<8x128xf32>
    %251 = arith.addf %250, %249 : vector<8x128xf32>
    %252 = arith.divf %250, %251 : vector<8x128xf32>
    %253 = vector.extract_strided_slice %240 {offsets = [0, 256], sizes = [8, 128], strides = [1, 1]} : vector<8x512xf32> to vector<8x128xf32>
    %254 = math.tanh %253 : vector<8x128xf32>
    %255 = vector.extract_strided_slice %240 {offsets = [0, 384], sizes = [8, 128], strides = [1, 1]} : vector<8x512xf32> to vector<8x128xf32>
    %256 = arith.negf %255 : vector<8x128xf32>
    %257 = math.exp %256 : vector<8x128xf32>
    %cst_72 = arith.constant 1.000000e+00 : f32
    %258 = vector.broadcast %cst_72 : f32 to vector<8x128xf32>
    %259 = arith.addf %258, %257 : vector<8x128xf32>
    %260 = arith.divf %258, %259 : vector<8x128xf32>
    %261 = arith.mulf %252, %231 : vector<8x128xf32>
    %262 = arith.mulf %246, %254 : vector<8x128xf32>
    %263 = arith.addf %261, %262 : vector<8x128xf32>
    %264 = math.tanh %263 : vector<8x128xf32>
    %265 = arith.mulf %260, %264 : vector<8x128xf32>
    %c8_i32_73 = arith.constant 8 : i32
    %c0_74 = arith.constant 0 : index
    %c0_75 = arith.constant 0 : index
    %266 = vector.load %arg5[%c0_74, %c0_75] : memref<128x1xf32, #tpu.memory_space<vmem>>, vector<128x1xf32>
    %cst_76 = arith.constant dense<0.000000e+00> : vector<8x1xf32>
    %267 = tpu.matmul %265, %266, %cst_76 {dimension_numbers = #tpu.dot_dimension_numbers<[1], [0], [0], [1], [0, 0, 1, 1], [], []>} : vector<8x128xf32>, vector<128x1xf32>, vector<8x1xf32> -> vector<8x1xf32>
    %c0_77 = arith.constant 0 : index
    %c0_78 = arith.constant 0 : index
    %268 = vector.load %arg6[%c0_77, %c0_78] : memref<1x1xf32, #tpu.memory_space<vmem>>, vector<1x1xf32>
    %269 = vector.broadcast %268 : vector<1x1xf32> to vector<8x1xf32>
    %270 = arith.addf %267, %269 : vector<8x1xf32>
    %c0_79 = arith.constant 0 : index
    %c0_80 = arith.constant 0 : index
    %271 = vector.load %arg7[%c0_79, %c0_80] : memref<8x1xf32, #tpu.memory_space<vmem>>, vector<8x1xf32>
    tpu.vector_store %arg7[%c0_79, %c0_80], %270 {strides = array<i32>} : memref<8x1xf32, #tpu.memory_space<vmem>>, vector<8x1xf32>,
    return
  }
  func.func @transform_0(%arg0: i32) -> (i32, i32, i32) {
    %c0_i32 = arith.constant 0 : i32
    %c0_i32_0 = arith.constant 0 : i32
    %c0_i32_1 = arith.constant 0 : i32
    return %arg0, %c0_i32, %c0_i32_0 : i32, i32, i32
  }
  func.func @transform_1(%arg0: i32) -> (i32, i32) {
    %c0_i32 = arith.constant 0 : i32
    %c0_i32_0 = arith.constant 0 : i32
    %c0_i32_1 = arith.constant 0 : i32
    return %c0_i32, %c0_i32_0 : i32, i32
  }
  func.func @transform_2(%arg0: i32) -> (i32, i32) {
    %c0_i32 = arith.constant 0 : i32
    %c0_i32_0 = arith.constant 0 : i32
    %c0_i32_1 = arith.constant 0 : i32
    return %c0_i32, %c0_i32_0 : i32, i32
  }
  func.func @transform_3(%arg0: i32) -> (i32, i32) {
    %c0_i32 = arith.constant 0 : i32
    %c0_i32_0 = arith.constant 0 : i32
    %c0_i32_1 = arith.constant 0 : i32
    return %c0_i32, %c0_i32_0 : i32, i32
  }
  func.func @transform_4(%arg0: i32) -> (i32, i32) {
    %c0_i32 = arith.constant 0 : i32
    %c0_i32_0 = arith.constant 0 : i32
    %c0_i32_1 = arith.constant 0 : i32
    return %c0_i32, %c0_i32_0 : i32, i32
  }
  func.func @transform_5(%arg0: i32) -> (i32, i32) {
    %c0_i32 = arith.constant 0 : i32
    %c0_i32_0 = arith.constant 0 : i32
    %c0_i32_1 = arith.constant 0 : i32
    return %c0_i32, %c0_i32_0 : i32, i32
  }
  func.func @transform_6(%arg0: i32) -> (i32, i32) {
    %c0_i32 = arith.constant 0 : i32
    %c0_i32_0 = arith.constant 0 : i32
    return %arg0, %c0_i32 : i32, i32
  }
}

</mosaic_0001>

<bundles_post_ra>
// kernel: tpu_custom_call.1
= control target key start
LH: loop header
LB: loop body
LE: loop exit
PB: predicated region body
PF: predicated region fallthrough
CT: control target
= control target key end

     0   :  { %s3022_s0 = inlined_call_operand.vmem [shape: f32[1,64,4], index: 0, kind: input, shape index: {}]   ;;  %s3023_s1 = inlined_call_operand.vmem [shape: f32[4,512], index: 1, kind: input, shape index: {}]   ;;  %s3024_s2 = inlined_call_operand.hbm [shape: f32[128,512], index: 2, kind: input, shape index: {}]   ;;  %s3025_s3 = inlined_call_operand.vmem [shape: f32[1,512], index: 3, kind: input, shape index: {}]   ;;  %s3026_s4 = inlined_call_operand.vmem [shape: f32[128,1], index: 4, kind: input, shape index: {}]   ;;  %s3027_s5 = inlined_call_operand.<no memory space> [shape: f32[1,1], index: 5, kind: input, shape index: {}]   ;;  %s3028_s6 = inlined_call_operand.vmem [shape: f32[8,1], index: 6, kind: output, shape index: {}]  }
   0x1   :  { %v11_v0 = vstv %s3027_s5 }
   0x2   :  { %12 = vst [vmem:[#allocation3] sm:$0x1] %v11_v0 }
   0x3   :  { %13 = vsyncpa [#allocation5], 0  ;;  %s22_s25 = sshll.u32 %s3024_s2, 4  ;;  %s1936_s26 = smov [#allocation4]   ;;  %s23_s25 = int_to_ptr.hbm [resolvable:$true] %s22_s25 }
   0x4   :  { %s24_s27 = sshll.u32 %s1936_s26, 4  ;;  %s1937_s28 = smov 512   ;;  %s25_s27 = int_to_ptr.vmem [resolvable:$true] %s24_s27 }
   0x5   :  { %s1938_s29 = smov 32  }
   0x6   :  { %30 = dma.hbm_to_vmem [thread:$0]  %s23_s25, 8192, %s25_s27, [#allocation5], %s1937_s28, %s1937_s28, %s1938_s29  }
   0x7   :  { %1934 = dma.done.wait [#allocation5], 8192  }
   0x8   :  { %1935 = vsyncadd [#allocation5], 4294959104  ;;  %v49_v1 = vld [vmem:[%s3023_s1] sm:$0xff]  ;;  %v50_v2 = vld [vmem:[%s3023_s1 + $0x8] sm:$0xff]  ;;  %vm95_vm0 = vcmask 1043456   ;;  %vm70_vm1 = vcmask 31744  }
   0x9   :  { %63 = vst [vmem:[#allocation1] ss:$2 sm:$0xff] %v49_v1  ;;  %v41_v4 = vld [vmem:[%s3022_s0] sm:$0xff]  ;;  %v1993_v5 = vld [vmem:[%s3022_s0 + $0x28] sm:$0xff]  ;;  %v2000_v6 = vld [vmem:[%s3022_s0 + $0x30] sm:$0xff] }
   0xa   :  { %65 = vst [vmem:[#allocation1 + $0x10] ss:$2 sm:$0xff] %v50_v2  ;;  %v2005_v7 = vld [vmem:[%s3022_s0 + $0x38] sm:$0xff]  ;;  %v2018_v12 = vld [vmem:[#allocation4 + $0x1e0] sm:$0xff]  ;;  %v2020_v13 = vld [vmem:[#allocation4 + $0x1f8] sm:$0xff] }
   0xb   :  { %v2012_v11 = vld [vmem:[#allocation4 + $0x1e8] sm:$0xff]  ;;  %v2026_v15 = vld [vmem:[#allocation4 + $0x1f0] sm:$0xff]  ;;  %v2030_v16 = vld [vmem:[#allocation4 + $0x1c0] sm:$0xff] }
   0xc   :  { %v2024_v14 = vld [vmem:[#allocation4 + $0x1c8] sm:$0xff]  ;;  %v2032_v17 = vld [vmem:[#allocation4 + $0x1d8] sm:$0xff]  ;;  %v2038_v19 = vld [vmem:[#allocation4 + $0x1d0] sm:$0xff] }
   0xd   :  { %v2036_v18 = vld [vmem:[#allocation4 + $0x1a8] sm:$0xff]  ;;  %v42_v20 = vld [vmem:[%s3022_s0 + $0x8] sm:$0xff]  ;;  %v2057_v24 = vld [vmem:[#allocation4 + $0x1b0] sm:$0xff] }
   0xe   :  { %v2047_v21 = vld [vmem:[#allocation4 + $0x1a0] sm:$0xff]  ;;  %v2050_v22 = vld [vmem:[#allocation4 + $0x188] sm:$0xff]  ;;  %v2055_v23 = vld [vmem:[#allocation4 + $0x1b8] sm:$0xff] }
   0xf   :  { %v2061_v25 = vld [vmem:[#allocation4 + $0x180] sm:$0xff]  ;;  %v2063_v26 = vld [vmem:[#allocation4 + $0x168] sm:$0xff]  ;;  %v2067_v27 = vld [vmem:[#allocation4 + $0x198] sm:$0xff] }
  0x10   :  { %v66_v3 = vld.sshfl [vmem:[#allocation1] sm:$0xff pattern:$0x75316420]  ;;  %v67_v8 = vld.sshfl [vmem:[#allocation1 + $0x8] sm:$0xff pattern:$0x75316420] }
  0x11   :  { %1650 = vmatpush.msk.msra.mxu0 %vm95_vm0, %v66_v3  ;;  %1710 = vmatpush.msk.msra.mxu1 %vm95_vm0, %v66_v3  ;;  %v69_v9 = vld.sshfl [vmem:[#allocation1 + $0x18] sm:$0xff pattern:$0x75316420]  ;;  %v68_v10 = vld.sshfl [vmem:[#allocation1 + $0x10] sm:$0xff pattern:$0x75316420] }
  0x12   :  { %1711 = vmatpush.msk.msra.mxu2 %vm95_vm0, %v66_v3  ;;  %1712 = vmatpush.msk.msra.mxu3 %vm95_vm0, %v66_v3  ;;  %v2069_v28 = vld [vmem:[#allocation4 + $0x190] sm:$0xff]  ;;  %v2071_v29 = vld [vmem:[#allocation4 + $0x160] sm:$0xff]  ;;  %v2074_v30 = vld [vmem:[#allocation4 + $0x148] sm:$0xff] }
  0x13   :  { %1651 = vmatmul.msk.f32.vlgmr.msra.gmra.mxu0 %vm70_vm1, %v41_v4  ;;  %1656 = vmatmul.msk.f32.vlgmr.msra.gmra.mxu1 %vm70_vm1, %v1993_v5  ;;  %v2079_v31 = vld [vmem:[#allocation4 + $0x178] sm:$0xff]  ;;  %v2081_v32 = vld [vmem:[#allocation4 + $0x170] sm:$0xff]  ;;  %v43_v33 = vld [vmem:[%s3022_s0 + $0x10] sm:$0xff] }
  0x14   :  { %1657 = vmatmul.msk.f32.vlgmr.msra.gmra.mxu2 %vm70_vm1, %v2000_v6  ;;  %1658 = vmatmul.msk.f32.vlgmr.msra.gmra.mxu3 %vm70_vm1, %v2005_v7  ;;  %v2090_v34 = vld [vmem:[#allocation4 + $0x140] sm:$0xff]  ;;  %v2093_v35 = vld [vmem:[#allocation4 + $0x128] sm:$0xff]  ;;  %v2098_v36 = vld [vmem:[#allocation4 + $0x158] sm:$0xff] }
  0x15   :  { %1659 = vmatpush.msk.msrb.mxu1 %vm95_vm0, %v67_v8  ;;  %1677 = vmatpush.msk.msrb.mxu3 %vm95_vm0, %v69_v9  ;;  %v2100_v37 = vld [vmem:[#allocation4 + $0x150] sm:$0xff]  ;;  %v2104_v38 = vld [vmem:[#allocation4 + $0x120] sm:$0xff]  ;;  %v2106_v39 = vld [vmem:[#allocation4 + $0x108] sm:$0xff] }
  0x16   :  { %1668 = vmatpush.msk.msrb.mxu2 %vm95_vm0, %v68_v10  ;;  %371 = vmatpush.msrb.mxu0 %v2018_v12  ;;  %v2110_v40 = vld [vmem:[#allocation4 + $0x138] sm:$0xff]  ;;  %v2112_v41 = vld [vmem:[#allocation4 + $0x130] sm:$0xff]  ;;  %v2114_v42 = vld [vmem:[#allocation4 + $0x100] sm:$0xff] }
  0x17   :  { %391 = vmatpush.msra.mxu1 %v2012_v11  ;;  %431 = vmatpush.msra.mxu3 %v2020_v13  ;;  %v2117_v43 = vld [vmem:[#allocation4 + $0xe8] sm:$0xff]  ;;  %v2122_v44 = vld [vmem:[#allocation4 + $0x118] sm:$0xff]  ;;  %v2124_v45 = vld [vmem:[#allocation4 + $0x110] sm:$0xff] }
  0x18   :  { %411 = vmatpush.msra.mxu2 %v2026_v15  ;;  %372 = vmatpush.msrb.mxu0 %v2030_v16  ;;  %v44_v46 = vld [vmem:[%s3022_s0 + $0x18] sm:$0xff]  ;;  %v2133_v47 = vld [vmem:[#allocation4 + $0xe0] sm:$0xff]  ;;  %v2141_v49 = vld [vmem:[#allocation4 + $0xf8] sm:$0xff] }
  0x19   :  { %392 = vmatpush.msra.mxu1 %v2024_v14  ;;  %432 = vmatpush.msra.mxu3 %v2032_v17  ;;  %v2136_v48 = vld [vmem:[#allocation4 + $0xc8] sm:$0xff]  ;;  %v2143_v50 = vld [vmem:[#allocation4 + $0xf0] sm:$0xff]  ;;  %v2147_v51 = vld [vmem:[#allocation4 + $0xc0] sm:$0xff] }
  0x1a   :  { %412 = vmatpush.msra.mxu2 %v2038_v19  ;;  %373 = vmatpush.msrb.mxu0 %v2047_v21  ;;  %v2149_v52 = vld [vmem:[#allocation4 + $0xa8] sm:$0xff]  ;;  %v2153_v53 = vld [vmem:[#allocation4 + $0xd8] sm:$0xff]  ;;  %v2155_v54 = vld [vmem:[#allocation4 + $0xd0] sm:$0xff] }
  0x1b   :  { %393 = vmatpush.msra.mxu1 %v2036_v18  ;;  %1652 = vmatmul.msk.f32.gmra.mxu0 %vm70_vm1, %v42_v20  ;;  %3125 = vst [vmem:[#allocation7_spill] sm:$0xff] %v2149_v52  ;;  %v2157_v55 = vld [vmem:[#allocation4 + $0xa0] sm:$0xff]  ;;  %v2160_v56 = vld [vmem:[#allocation4 + $0x88] sm:$0xff]  ;;  %v2165_v57 = vld [vmem:[#allocation4 + $0xb8] sm:$0xff] }
  0x1c   :  { %1660 = vmatmul.msk.f32.vlgmr.msrb.gmra.mxu1 %vm70_vm1, %v41_v4  ;;  %1669 = vmatmul.msk.f32.vlgmr.msrb.gmra.mxu2 %vm70_vm1, %v41_v4  ;;  %3126 = vst [vmem:[#allocation8_spill] sm:$0xff] %v2153_v53  ;;  %v2167_v58 = vld [vmem:[#allocation4 + $0xb0] sm:$0xff]  ;;  %v2169_v59 = vld [vmem:[#allocation4 + $0x80] sm:$0xff]  ;;  %v2184_v62 = vld [vmem:[#allocation4 + $0x68] sm:$0xff] }
  0x1d   :  { %1678 = vmatmul.msk.f32.vlgmr.msrb.gmra.mxu3 %vm70_vm1, %v41_v4  ;;  %394 = vmatpush.msra.mxu1 %v2050_v22  ;;  %3127 = vst [vmem:[#allocation9_spill] sm:$0xff] %v2157_v55  ;;  %v45_v60 = vld [vmem:[%s3022_s0 + $0x20] sm:$0xff]  ;;  %v2178_v61 = vld [vmem:[#allocation4 + $0x60] sm:$0xff]  ;;  %v2196_v2 = vld [vmem:[#allocation4 + $0x48] sm:$0xff] }
  0x1e   :  { %433 = vmatpush.msra.mxu3 %v2055_v23  ;;  %413 = vmatpush.msra.mxu2 %v2057_v24  ;;  %3128 = vst [vmem:[#allocation10_spill] sm:$0xff] %v2160_v56  ;;  %v2186_v63 = vld [vmem:[#allocation4 + $0x98] sm:$0xff]  ;;  %v2190_v0 = vld [vmem:[#allocation4 + $0x40] sm:$0xff]  ;;  %v2192_v1 = vld [vmem:[#allocation4 + $0x90] sm:$0xff] }
  0x1f   :  { %374 = vmatpush.msrb.mxu0 %v2061_v25  ;;  %395 = vmatpush.msra.mxu1 %v2063_v26  ;;  %3129 = vst [vmem:[#allocation11_spill] sm:$0xff] %v2165_v57  ;;  %v2198_v3 = vld [vmem:[#allocation4 + $0x78] sm:$0xff]  ;;  %v2200_v4 = vld [vmem:[#allocation4 + $0x20] sm:$0xff]  ;;  %v2204_v8 = vld [vmem:[#allocation4 + $0x70] sm:$0xff] }
  0x20   :  { %434 = vmatpush.msra.mxu3 %v2067_v27  ;;  %414 = vmatpush.msra.mxu2 %v2069_v28  ;;  %3130 = vst [vmem:[#allocation12_spill] sm:$0xff] %v2167_v58  ;;  %v2208_v9 = vld [vmem:[#allocation4 + $0x28] sm:$0xff]  ;;  %v2210_v10 = vld [vmem:[#allocation4 + $0x58] sm:$0xff] }
  0x21   :  { %375 = vmatpush.msrb.mxu0 %v2071_v29  ;;  %396 = vmatpush.msra.mxu1 %v2074_v30  ;;  %3131 = vst [vmem:[#allocation13_spill] sm:$0xff] %v2169_v59 }
  0x22   :  { %435 = vmatpush.msra.mxu3 %v2079_v31  ;;  %415 = vmatpush.msra.mxu2 %v2081_v32  ;;  %3132 = vst [vmem:[#allocation14_spill] sm:$0xff] %v2178_v61 }
  0x23   :  { %1653 = vmatmul.msk.f32.gmra.mxu0 %vm70_vm1, %v43_v33  ;;  %397 = vmatpush.msra.mxu1 %v2093_v35  ;;  %3133 = vst [vmem:[#allocation15_spill] sm:$0xff] %v2184_v62 }
  0x24   :  { %1661 = vmatmul.msk.f32.gmra.mxu1 %vm70_vm1, %v42_v20  ;;  %1670 = vmatmul.msk.f32.gmra.mxu2 %vm70_vm1, %v42_v20  ;;  %3134 = vst [vmem:[#allocation16_spill] sm:$0xff] %v2186_v63 }
  0x25   :  { %1679 = vmatmul.msk.f32.gmra.mxu3 %vm70_vm1, %v42_v20  ;;  %376 = vmatpush.msrb.mxu0 %v2090_v34  ;;  %3135 = vst [vmem:[#allocation17_spill] sm:$0xff] %v2190_v0  ;;  %v2212_v20 = vld [vmem:[#allocation4] sm:$0xff] }
  0x26   :  { %436 = vmatpush.msra.mxu3 %v2098_v36  ;;  %416 = vmatpush.msra.mxu2 %v2100_v37  ;;  %3136 = vst [vmem:[#allocation18_spill] sm:$0xff] %v2192_v1 }
  0x27   :  { %377 = vmatpush.msrb.mxu0 %v2104_v38  ;;  %398 = vmatpush.msra.mxu1 %v2106_v39  ;;  %3137 = vst [vmem:[#allocation19_spill] sm:$0xff] %v2196_v2 }
  0x28   :  { %437 = vmatpush.msra.mxu3 %v2110_v40  ;;  %417 = vmatpush.msra.mxu2 %v2112_v41  ;;  %3138 = vst [vmem:[#allocation20_spill] sm:$0xff] %v2198_v3 }
  0x29   :  { %378 = vmatpush.msrb.mxu0 %v2114_v42  ;;  %399 = vmatpush.msra.mxu1 %v2117_v43  ;;  %3139 = vst [vmem:[#allocation21_spill] sm:$0xff] %v2200_v4 }
  0x2a   :  { %438 = vmatpush.msra.mxu3 %v2122_v44  ;;  %418 = vmatpush.msra.mxu2 %v2124_v45  ;;  %3140 = vst [vmem:[#allocation22_spill] sm:$0xff] %v2204_v8 }
  0x2b   :  { %1654 = vmatmul.msk.f32.gmra.mxu0 %vm70_vm1, %v44_v46  ;;  %400 = vmatpush.msra.mxu1 %v2136_v48  ;;  %3141 = vst [vmem:[#allocation23_spill] sm:$0xff] %v2208_v9 }
  0x2c   :  { %1662 = vmatmul.msk.f32.gmra.mxu1 %vm70_vm1, %v43_v33  ;;  %1671 = vmatmul.msk.f32.gmra.mxu2 %vm70_vm1, %v43_v33  ;;  %3142 = vst [vmem:[#allocation24_spill] sm:$0xff] %v2210_v10 }
  0x2d   :  { %1680 = vmatmul.msk.f32.gmra.mxu3 %vm70_vm1, %v43_v33  ;;  %379 = vmatpush.msrb.mxu0 %v2133_v47  ;;  %3143 = vst [vmem:[#allocation25_spill] sm:$0xff] %v2212_v20  ;;  %v2220_v33 = vld [vmem:[#allocation4 + $0x50] sm:$0xff] }
  0x2e   :  { %439 = vmatpush.msra.mxu3 %v2141_v49  ;;  %419 = vmatpush.msra.mxu2 %v2143_v50  ;;  %3144 = vst [vmem:[#allocation26_spill] sm:$0xff] %v2220_v33 }
  0x2f   :  { %380 = vmatpush.msrb.mxu0 %v2147_v51  ;;  %401 = vmatpush.msra.mxu1 %v2149_v52 }
  0x30   :  { %440 = vmatpush.msra.mxu3 %v2153_v53  ;;  %420 = vmatpush.msra.mxu2 %v2155_v54 }
  0x31   :  { %381 = vmatpush.msrb.mxu0 %v2157_v55  ;;  %402 = vmatpush.msra.mxu1 %v2160_v56 }
  0x32   :  { %441 = vmatpush.msra.mxu3 %v2165_v57  ;;  %421 = vmatpush.msra.mxu2 %v2167_v58 }
  0x33   :  { %382 = vmatpush.msrb.mxu0 %v2169_v59  ;;  %403 = vmatpush.msra.mxu1 %v2184_v62 }
  0x34   :  { %1663 = vmatmul.msk.f32.gmra.mxu1 %vm70_vm1, %v44_v46  ;;  %1655 = vmatmul.msk.f32.gmra.mxu0 %vm70_vm1, %v45_v60 }
  0x35   :  { %1672 = vmatmul.msk.f32.gmra.mxu2 %vm70_vm1, %v44_v46  ;;  %1681 = vmatmul.msk.f32.gmra.mxu3 %vm70_vm1, %v44_v46  ;;  %v2224_v46 = vld [vmem:[#allocation4 + $0x8] sm:$0xff] }
  0x36   :  { %383 = vmatpush.msrb.mxu0 %v2178_v61  ;;  %442 = vmatpush.msra.mxu3 %v2186_v63  ;;  %3145 = vst [vmem:[#allocation27_spill] sm:$0xff] %v2224_v46 }
  0x37   :  { %422 = vmatpush.msra.mxu2 %v2192_v1  ;;  %404 = vmatpush.msra.mxu1 %v2196_v2  ;;  %v1939_v2 = vmov 0.0  }
  0x38   :  { %384 = vmatpush.msrb.mxu0 %v2190_v0  ;;  %443 = vmatpush.msra.mxu3 %v2198_v3  ;;  %v2226_v0 = vld [vmem:[#allocation4 + $0x38] sm:$0xff] }
  0x39   :  { %423 = vmatpush.msra.mxu2 %v2204_v8  ;;  %405 = vmatpush.msra.mxu1 %v2208_v9  ;;  %3146 = vst [vmem:[#allocation28_spill] sm:$0xff] %v2226_v0  ;;  %v2234_v9 = vld [vmem:[#allocation4 + $0x18] sm:$0xff] }
  0x3a   :  { %385 = vmatpush.msrb.mxu0 %v2200_v4  ;;  %444 = vmatpush.msra.mxu3 %v2210_v10  ;;  %v2230_v4 = vld [vmem:[#allocation4 + $0x30] sm:$0xff]  ;;  %3148 = vst [vmem:[#allocation30_spill] sm:$0xff] %v2234_v9 }
  0x3b   :  { %3147 = vst [vmem:[#allocation29_spill] sm:$0xff] %v2230_v4  ;;  %424 = vmatpush.msra.mxu2 %v2220_v33  ;;  %406 = vmatpush.msra.mxu1 %v2224_v46 }
  0x3c   :  { %386 = vmatpush.msrb.mxu0 %v2212_v20  ;;  %1664 = vmatmul.msk.f32.gmra.mxu1 %vm70_vm1, %v45_v60  ;;  %v2238_v20 = vld [vmem:[#allocation4 + $0x10] sm:$0xff] }
  0x3d   :  { %1673 = vmatmul.msk.f32.gmra.mxu2 %vm70_vm1, %v45_v60  ;;  %387 = vmatmul.f32.vlgmr.msrb.gmra.mxu0 %v1939_v2  ;;  %3149 = vst [vmem:[#allocation31_spill] sm:$0xff] %v2238_v20 }
  0x3e   :  { %1682 = vmatmul.msk.f32.gmra.mxu3 %vm70_vm1, %v45_v60  ;;  %425 = vmatpush.msra.mxu2 %v2230_v4  ;;  %v3153_v60 = vld [vmem:[#allocation23_spill] sm:$0xff] }
  0x3f   :  { %445 = vmatpush.msra.mxu3 %v2226_v0  ;;  %525 = vmatpush.msra.mxu0 %v2018_v12 }
  0x40   :  { %545 = vmatpush.msrb.mxu1 %v2012_v11  ;;  %426 = vmatpush.msra.mxu2 %v2238_v20 }
  0x41   :  { %446 = vmatpush.msra.mxu3 %v2234_v9  ;;  %526 = vmatpush.msra.mxu0 %v2030_v16 }
  0x42   :  { %565 = vmatpush.msrb.mxu2 %v2026_v15  ;;  %546 = vmatpush.msrb.mxu1 %v2024_v14 }
  0x43   :  { %585 = vmatpush.msrb.mxu3 %v2020_v13  ;;  %527 = vmatpush.msra.mxu0 %v2047_v21 }
  0x44   :  { %1665 = vmatmul.msk.f32.gmra.mxu1 %vm70_vm1, %v1993_v5  ;;  %566 = vmatpush.msrb.mxu2 %v2038_v19 }
  0x45   :  { %586 = vmatpush.msrb.mxu3 %v2032_v17  ;;  %1674 = vmatmul.msk.f32.gmra.mxu2 %vm70_vm1, %v1993_v5 }
  0x46   :  { %1683 = vmatmul.msk.f32.gmra.mxu3 %vm70_vm1, %v1993_v5  ;;  %547 = vmatpush.msrb.mxu1 %v2036_v18  ;;  %v3150_v5 = vld [vmem:[#allocation17_spill] sm:$0xff] }
  0x47   :  { %567 = vmatpush.msrb.mxu2 %v2057_v24  ;;  %587 = vmatpush.msrb.mxu3 %v2055_v23 }
  0x48   :  { %528 = vmatpush.msra.mxu0 %v2061_v25  ;;  %548 = vmatpush.msrb.mxu1 %v2050_v22 }
  0x49   :  { %568 = vmatpush.msrb.mxu2 %v2069_v28  ;;  %588 = vmatpush.msrb.mxu3 %v2067_v27 }
  0x4a   :  { %529 = vmatpush.msra.mxu0 %v2071_v29  ;;  %549 = vmatpush.msrb.mxu1 %v2063_v26 }
  0x4b   :  { %569 = vmatpush.msrb.mxu2 %v2081_v32  ;;  %589 = vmatpush.msrb.mxu3 %v2079_v31 }
  0x4c   :  { %1666 = vmatmul.msk.f32.gmra.mxu1 %vm70_vm1, %v2000_v6  ;;  %530 = vmatpush.msra.mxu0 %v2090_v34 }
  0x4d   :  { %1675 = vmatmul.msk.f32.gmra.mxu2 %vm70_vm1, %v2000_v6  ;;  %550 = vmatpush.msrb.mxu1 %v2074_v30 }
  0x4e   :  { %1684 = vmatmul.msk.f32.gmra.mxu3 %vm70_vm1, %v2000_v6  ;;  %570 = vmatpush.msrb.mxu2 %v2100_v37  ;;  %v3151_v6 = vld [vmem:[#allocation19_spill] sm:$0xff] }
  0x4f   :  { %590 = vmatpush.msrb.mxu3 %v2098_v36  ;;  %531 = vmatpush.msra.mxu0 %v2104_v38 }
  0x50   :  { %551 = vmatpush.msrb.mxu1 %v2093_v35  ;;  %571 = vmatpush.msrb.mxu2 %v2112_v41 }
  0x51   :  { %591 = vmatpush.msrb.mxu3 %v2110_v40  ;;  %532 = vmatpush.msra.mxu0 %v2114_v42 }
  0x52   :  { %552 = vmatpush.msrb.mxu1 %v2106_v39  ;;  %572 = vmatpush.msrb.mxu2 %v2124_v45 }
  0x53   :  { %592 = vmatpush.msrb.mxu3 %v2122_v44  ;;  %533 = vmatpush.msra.mxu0 %v2133_v47 }
  0x54   :  { %1667 = vmatmul.msk.f32.gmra.mxu1 %vm70_vm1, %v2005_v7  ;;  %573 = vmatpush.msrb.mxu2 %v2143_v50 }
  0x55   :  { %1676 = vmatmul.msk.f32.gmra.mxu2 %vm70_vm1, %v2005_v7  ;;  %553 = vmatpush.msrb.mxu1 %v2117_v43 }
  0x56   :  { %1685 = vmatmul.msk.f32.gmra.mxu3 %vm70_vm1, %v2005_v7  ;;  %534 = vmatpush.msra.mxu0 %v2147_v51  ;;  %v3152_v7 = vld [vmem:[#allocation21_spill] sm:$0xff] }
  0x57   :  { %593 = vmatpush.msrb.mxu3 %v2141_v49  ;;  %554 = vmatpush.msrb.mxu1 %v2136_v48 }
  0x58   :  { %574 = vmatpush.msrb.mxu2 %v2155_v54  ;;  %535 = vmatpush.msra.mxu0 %v2157_v55 }
  0x59   :  { %594 = vmatpush.msrb.mxu3 %v2153_v53  ;;  %555 = vmatpush.msrb.mxu1 %v2149_v52 }
  0x5a   :  { %575 = vmatpush.msrb.mxu2 %v2167_v58  ;;  %536 = vmatpush.msra.mxu0 %v2169_v59 }
  0x5b   :  { %595 = vmatpush.msrb.mxu3 %v2165_v57  ;;  %556 = vmatpush.msrb.mxu1 %v2160_v56 }
  0x5c   :  { %407 = vmatmul.f32.vlgmr.msra.gmra.mxu1 %v1939_v2  ;;  %576 = vmatpush.msrb.mxu2 %v2192_v1 }
  0x5d   :  { %427 = vmatmul.f32.vlgmr.msra.gmra.mxu2 %v1939_v2  ;;  %596 = vmatpush.msrb.mxu3 %v2186_v63 }
  0x5e   :  { %447 = vmatmul.f32.vlgmr.msra.gmra.mxu3 %v1939_v2  ;;  %537 = vmatpush.msra.mxu0 %v2178_v61  ;;  %v3154_v2 = vld [vmem:[#allocation25_spill] sm:$0xff] }
  0x5f   :  { %557 = vmatpush.msrb.mxu1 %v2184_v62  ;;  %577 = vmatpush.msrb.mxu2 %v2204_v8 }
  0x60   :  { %597 = vmatpush.msrb.mxu3 %v2198_v3  ;;  %538 = vmatpush.msra.mxu0 %v3150_v5 }
  0x61   :  { %558 = vmatpush.msrb.mxu1 %v3151_v6  ;;  %578 = vmatpush.msrb.mxu2 %v2220_v33 }
  0x62   :  { %598 = vmatpush.msrb.mxu3 %v2210_v10  ;;  %539 = vmatpush.msra.mxu0 %v3152_v7 }
  0x63   :  { %559 = vmatpush.msrb.mxu1 %v3153_v60  ;;  %579 = vmatpush.msrb.mxu2 %v2230_v4 }
  0x64   :  { %599 = vmatpush.msrb.mxu3 %v2226_v0  ;;  %540 = vmatpush.msra.mxu0 %v3154_v2 }
  0x65   :  { %560 = vmatpush.msrb.mxu1 %v2224_v46  ;;  %580 = vmatpush.msrb.mxu2 %v2238_v20 }
  0x66   :  { %600 = vmatpush.msrb.mxu3 %v2234_v9  ;;  %679 = vmatpush.msrb.mxu0 %v2018_v12 }
  0x67   :  { %699 = vmatpush.msra.mxu1 %v2012_v11  ;;  %719 = vmatpush.msra.mxu2 %v2026_v15 }
  0x68   :  { %739 = vmatpush.msra.mxu3 %v2020_v13  ;;  %680 = vmatpush.msrb.mxu0 %v2030_v16 }
  0x69   :  { %700 = vmatpush.msra.mxu1 %v2024_v14  ;;  %720 = vmatpush.msra.mxu2 %v2038_v19 }
  0x6a   :  { %740 = vmatpush.msra.mxu3 %v2032_v17  ;;  %681 = vmatpush.msrb.mxu0 %v2047_v21 }
  0x6b   :  { %701 = vmatpush.msra.mxu1 %v2036_v18  ;;  %721 = vmatpush.msra.mxu2 %v2057_v24 }
  0x6c   :  { %741 = vmatpush.msra.mxu3 %v2055_v23  ;;  %682 = vmatpush.msrb.mxu0 %v2061_v25 }
  0x6d   :  { %702 = vmatpush.msra.mxu1 %v2050_v22  ;;  %722 = vmatpush.msra.mxu2 %v2069_v28 }
  0x6e   :  { %742 = vmatpush.msra.mxu3 %v2067_v27  ;;  %683 = vmatpush.msrb.mxu0 %v2071_v29 }
  0x6f   :  { %703 = vmatpush.msra.mxu1 %v2063_v26  ;;  %723 = vmatpush.msra.mxu2 %v2081_v32 }
  0x70   :  { %743 = vmatpush.msra.mxu3 %v2079_v31  ;;  %684 = vmatpush.msrb.mxu0 %v2090_v34 }
  0x71   :  { %704 = vmatpush.msra.mxu1 %v2074_v30  ;;  %724 = vmatpush.msra.mxu2 %v2100_v37 }
  0x72   :  { %744 = vmatpush.msra.mxu3 %v2098_v36  ;;  %685 = vmatpush.msrb.mxu0 %v2104_v38 }
  0x73   :  { %705 = vmatpush.msra.mxu1 %v2093_v35  ;;  %725 = vmatpush.msra.mxu2 %v2112_v41 }
  0x74   :  { %745 = vmatpush.msra.mxu3 %v2110_v40  ;;  %686 = vmatpush.msrb.mxu0 %v2114_v42 }
  0x75   :  { %706 = vmatpush.msra.mxu1 %v2106_v39  ;;  %726 = vmatpush.msra.mxu2 %v2124_v45 }
  0x76   :  { %746 = vmatpush.msra.mxu3 %v2122_v44  ;;  %687 = vmatpush.msrb.mxu0 %v2133_v47 }
  0x77   :  { %707 = vmatpush.msra.mxu1 %v2117_v43  ;;  %727 = vmatpush.msra.mxu2 %v2143_v50 }
  0x78   :  { %747 = vmatpush.msra.mxu3 %v2141_v49  ;;  %688 = vmatpush.msrb.mxu0 %v2147_v51 }
  0x79   :  { %708 = vmatpush.msra.mxu1 %v2136_v48  ;;  %728 = vmatpush.msra.mxu2 %v2155_v54 }
  0x7a   :  { %748 = vmatpush.msra.mxu3 %v2153_v53  ;;  %689 = vmatpush.msrb.mxu0 %v2157_v55 }
  0x7b   :  { %709 = vmatpush.msra.mxu1 %v2149_v52  ;;  %729 = vmatpush.msra.mxu2 %v2167_v58 }
  0x7c   :  { %749 = vmatpush.msra.mxu3 %v2165_v57  ;;  %690 = vmatpush.msrb.mxu0 %v2169_v59 }
  0x7d   :  { %710 = vmatpush.msra.mxu1 %v2160_v56  ;;  %730 = vmatpush.msra.mxu2 %v2192_v1 }
  0x7e   :  { %750 = vmatpush.msra.mxu3 %v2186_v63  ;;  %691 = vmatpush.msrb.mxu0 %v2178_v61 }
  0x7f   :  { %711 = vmatpush.msra.mxu1 %v2184_v62  ;;  %731 = vmatpush.msra.mxu2 %v2204_v8 }
  0x80   :  { %751 = vmatpush.msra.mxu3 %v2198_v3  ;;  %692 = vmatpush.msrb.mxu0 %v3150_v5 }
  0x81   :  { %712 = vmatpush.msra.mxu1 %v3151_v6  ;;  %732 = vmatpush.msra.mxu2 %v2220_v33 }
  0x82   :  { %752 = vmatpush.msra.mxu3 %v2210_v10  ;;  %693 = vmatpush.msrb.mxu0 %v3152_v7  ;;  %v51_v10 = vld [vmem:[%s3025_s3] sm:$0xf] }
  0x83   :  { %713 = vmatpush.msra.mxu1 %v3153_v60  ;;  %733 = vmatpush.msra.mxu2 %v2230_v4  ;;  %v53_v33 = vperm.slane %v51_v10, 0 }
  0x84   :  { %753 = vmatpush.msra.mxu3 %v2226_v0  ;;  %694 = vmatpush.msrb.mxu0 %v3154_v2 }
  0x85   :  { %714 = vmatpush.msra.mxu1 %v2224_v46  ;;  %734 = vmatpush.msra.mxu2 %v2238_v20 }
  0x86   :  { %754 = vmatpush.msra.mxu3 %v2234_v9  ;;  %v54_v9 = vperm.slane %v51_v10, 1 }
  0x90   :  { %v121_v7 = vpop.f32.mrf.mxu0  ;;  %v136_v6 = vpop.f32.mrf.mxu1 }
  0x91   :  { %v2395_v60 = vadd.f32 %v136_v6, %v53_v33 }
  0x93   :  { %3155 = vst [vmem:[#allocation32_spill] sm:$0xff] %v2395_v60  ;;  %v2411_v60 = vperm.slane %v51_v10, 2 }
  0x97   :  { %v139_v4 = vpop.f32.mrf.mxu2  ;;  %v142_v5 = vpop.f32.mrf.mxu3 }
  0x98   :  { %v2397_v0 = vadd.f32 %v139_v4, %v53_v33  ;;  %v2399_v2 = vadd.f32 %v142_v5, %v53_v33  ;;  %v124_v46 = vpop.f32.mrf.mxu0  ;;  %v56_v4 = vperm.slane %v51_v10, 3 }
  0x99   :  { %v162_v3 = vpop.f32.mrf.mxu1  ;;  %v2401_v20 = vadd.f32 %v124_v46, %v53_v33 }
  0x9a   :  { %3156 = vst [vmem:[#allocation33_spill] sm:$0xff] %v2397_v0 }
  0x9b   :  { %3157 = vst [vmem:[#allocation34_spill] sm:$0xff] %v2399_v2 }
  0x9c   :  { %3158 = vst [vmem:[#allocation35_spill] sm:$0xff] %v2401_v20 }
  0x9f   :  { %v2403_v8 = vpop.f32.mrf.mxu2 }
  0xa0   :  { %v2405_v62 = vpop.f32.mrf.mxu3  ;;  %v127_v61 = vpop.f32.mrf.mxu0 }
  0xa1   :  { %v165_v63 = vpop.f32.mrf.mxu1  ;;  %v2407_v1 = vadd.f32 %v127_v61, %v53_v33 }
  0xa2   :  { %v2409_v6 = vadd.f32 %v165_v63, %v54_v9 }
  0xa3   :  { %3159 = vst [vmem:[#allocation36_spill] sm:$0xff] %v2407_v1 }
  0xa4   :  { %3160 = vst [vmem:[#allocation37_spill] sm:$0xff] %v2409_v6 }
  0xa7   :  { %v206_v5 = vpop.f32.mrf.mxu2 }
  0xa8   :  { %v247_v2 = vpop.f32.mrf.mxu3  ;;  %v2414_v0 = vadd.f32 %v206_v5, %v2411_v60  ;;  %v130_v20 = vpop.f32.mrf.mxu0 }
  0xa9   :  { %v2416_v46 = vadd.f32 %v247_v2, %v56_v4  ;;  %v168_v56 = vpop.f32.mrf.mxu1  ;;  %v2418_v59 = vadd.f32 %v130_v20, %v53_v33 }
  0xaa   :  { %3161 = vst [vmem:[#allocation38_spill] sm:$0xff] %v2414_v0  ;;  %v2420_v57 = vadd.f32 %v168_v56, %v54_v9 }
  0xab   :  { %3162 = vst [vmem:[#allocation39_spill] sm:$0xff] %v2416_v46 }
  0xac   :  { %3163 = vst [vmem:[#allocation40_spill] sm:$0xff] %v2418_v59 }
  0xad   :  { %3164 = vst [vmem:[#allocation41_spill] sm:$0xff] %v2420_v57 }
  0xaf   :  { %v209_v61 = vpop.f32.mrf.mxu2 }
  0xb0   :  { %v250_v1 = vpop.f32.mrf.mxu3  ;;  %v2423_v63 = vadd.f32 %v209_v61, %v2411_v60 }
  0xb1   :  { %v2425_v6 = vadd.f32 %v250_v1, %v56_v4  ;;  %v171_v10 = vpop.f32.mrf.mxu1  ;;  %v133_v58 = vpop.f32.mrf.mxu0 }
  0xb2   :  { %3165 = vst [vmem:[#allocation42_spill] sm:$0xff] %v2423_v63  ;;  %v2427_v52 = vadd.f32 %v171_v10, %v54_v9  ;;  %v2429_v5 = vadd.f32 %v133_v58, %v53_v33 }
  0xb3   :  { %3166 = vst [vmem:[#allocation43_spill] sm:$0xff] %v2425_v6 }
  0xb4   :  { %3167 = vst [vmem:[#allocation44_spill] sm:$0xff] %v2427_v52  ;;  %v122_v52 = vadd.f32 %v121_v7, %v53_v33 }
  0xb5   :  { %3168 = vst [vmem:[#allocation45_spill] sm:$0xff] %v2429_v5 }
  0xb8   :  { %v212_v2 = vpop.f32.mrf.mxu2  ;;  %v253_v20 = vpop.f32.mrf.mxu3 }
  0xb9   :  { %v2432_v0 = vadd.f32 %v212_v2, %v2411_v60  ;;  %v174_v56 = vpop.f32.mrf.mxu1  ;;  %v2434_v59 = vadd.f32 %v253_v20, %v56_v4 }
  0xba   :  { %v2436_v57 = vadd.f32 %v174_v56, %v54_v9  ;;  %v388_v5 = vpop.f32.mrf.mxu0 }
  0xbb   :  { %3169 = vst [vmem:[#allocation46_spill] sm:$0xff] %v2432_v0  ;;  %v451_v2 = vadd.f32 %v388_v5, %v122_v52  ;;  %v163_v5 = vadd.f32 %v162_v3, %v54_v9 }
  0xbc   :  { %3170 = vst [vmem:[#allocation47_spill] sm:$0xff] %v2434_v59 }
  0xbd   :  { %3171 = vst [vmem:[#allocation48_spill] sm:$0xff] %v2436_v57  ;;  %v1686_v57 = vmul.f32 -1.442695, %v451_v2 }
  0xbf   :  { %1718 = vpow2.f32 %v1686_v57 }
  0xc0   :  { %v215_v61 = vpop.f32.mrf.mxu2 }
  0xc1   :  { %v2439_v1 = vadd.f32 %v215_v61, %v2411_v60  ;;  %v256_v63 = vpop.f32.mrf.mxu3  ;;  %v177_v6 = vpop.f32.mrf.mxu1 }
  0xc2   :  { %v2441_v10 = vadd.f32 %v256_v63, %v56_v4  ;;  %v2443_v58 = vadd.f32 %v177_v6, %v54_v9 }
  0xc3   :  { %3172 = vst [vmem:[#allocation49_spill] sm:$0xff] %v2439_v1 }
  0xc4   :  { %3173 = vst [vmem:[#allocation50_spill] sm:$0xff] %v2441_v10 }
  0xc5   :  { %3174 = vst [vmem:[#allocation51_spill] sm:$0xff] %v2443_v58 }
  0xc8   :  { %v218_v0 = vpop.f32.mrf.mxu2 }
  0xc9   :  { %v2446_v46 = vadd.f32 %v218_v0, %v2411_v60  ;;  %v259_v20 = vpop.f32.mrf.mxu3  ;;  %v180_v56 = vpop.f32.mrf.mxu1 }
  0xca   :  { %v2448_v59 = vadd.f32 %v259_v20, %v56_v4  ;;  %v2450_v61 = vadd.f32 %v180_v56, %v54_v9  ;;  %v1719_v0 = vpop.eup %1718 }
  0xcb   :  { %3175 = vst [vmem:[#allocation52_spill] sm:$0xff] %v2446_v46  ;;  %v458_v7 = vadd.f32 1.0, %v1719_v0 }
  0xcc   :  { %3176 = vst [vmem:[#allocation53_spill] sm:$0xff] %v2448_v59 }
  0xcd   :  { %3177 = vst [vmem:[#allocation54_spill] sm:$0xff] %v2450_v61  ;;  %1720 = vrcp.f32 %v458_v7  ;;  %vm464_vm3 = vweird.f32 %v458_v7 }
  0xd0   :  { %v221_v1 = vpop.f32.mrf.mxu2 }
  0xd1   :  { %v2453_v63 = vadd.f32 %v221_v1, %v2411_v60  ;;  %v262_v6 = vpop.f32.mrf.mxu3  ;;  %v183_v58 = vpop.f32.mrf.mxu1 }
  0xd2   :  { %v2455_v33 = vadd.f32 %v262_v6, %v56_v4  ;;  %v2457_v52 = vadd.f32 %v183_v58, %v54_v9  ;;  %v245_v6 = vadd.f32 %v2405_v62, %v56_v4 }
  0xd3   :  { %3178 = vst [vmem:[#allocation55_spill] sm:$0xff] %v2453_v63  ;;  %v1721_v63 = vpop.eup %1720 }
  0xd4   :  { %3179 = vst [vmem:[#allocation56_spill] sm:$0xff] %v2455_v33  ;;  %v460_v0 = vmul.f32 %v1721_v63, %v458_v7  ;;  %vm465_vm2 = vweird.f32 %v1721_v63 }
  0xd5   :  { %3180 = vst [vmem:[#allocation57_spill] sm:$0xff] %v2457_v52  ;;  %vm466_vm5 = vmor %vm464_vm3, %vm465_vm2 }
  0xd8   :  { %v224_v46 = vpop.f32.mrf.mxu2 }
  0xd9   :  { %v2460_v2 = vadd.f32 %v224_v46, %v2411_v60  ;;  %v265_v20 = vpop.f32.mrf.mxu3  ;;  %v408_v56 = vpop.f32.mrf.mxu1 }
  0xda   :  { %v2462_v57 = vadd.f32 %v265_v20, %v56_v4  ;;  %v452_v61 = vadd.f32 %v408_v56, %v163_v5  ;;  %v204_v20 = vadd.f32 %v2403_v8, %v2411_v60 }
  0xdb   :  { %3181 = vst [vmem:[#allocation58_spill] sm:$0xff] %v2460_v2  ;;  %v461_v2 = vsub.f32 1.0, %v460_v0 }
  0xdc   :  { %3182 = vst [vmem:[#allocation59_spill] sm:$0xff] %v2462_v57  ;;  %v1687_v1 = vmul.f32 -1.442695, %v452_v61 }
  0xdd   :  { %v462_v61 = vmul.f32 %v1721_v63, %v461_v2 }
  0xde   :  { %1722 = vpow2.f32 %v1687_v1 }
  0xe0   :  { %v428_v46 = vpop.f32.mrf.mxu2 }
  0xe1   :  { %v448_v58 = vpop.f32.mrf.mxu3  ;;  %v453_v5 = vadd.f32 %v428_v46, %v204_v20 }
  0xe2   :  { %v454_v52 = vadd.f32 %v448_v58, %v245_v6  ;;  %v463_v6 = vadd.f32 %v1721_v63, %v462_v61 }
  0xe4   :  { %v1723_v33 = vpop.eup %1722  ;;  %v1688_v3 = vmul.f32 -1.442695, %v454_v52  ;;  %v467_v60 = vsel %vm466_vm5, %v1721_v63, %v463_v6 }
  0xe5   :  { %v477_v9 = vadd.f32 1.0, %v1723_v33  ;;  %v470_v33 = vand.u32 2147483648, %v458_v7 }
  0xe6   :  { %1724 = vpow2.f32 %v1688_v3  ;;  %v468_v3 = vand.u32 2147483647, %v458_v7 }
  0xe7   :  { %1726 = vrcp.f32 %v477_v9  ;;  %v489_v52 = vand.u32 2147483648, %v477_v9  ;;  %v487_v59 = vand.u32 2147483647, %v477_v9  ;;  %vm483_vm6 = vweird.f32 %v477_v9 }
  0xe8   :  { %1728 = vtanh.f32 %v453_v5  ;;  %v471_v20 = vor.u32 1.1754944e-38, %v470_v33  ;;  %vm469_vm8 = vcmp.eq.f32.partialorder %v468_v3, 8.507059e+37 }
  0xe9   :  { %v490_v46 = vor.u32 1.1754944e-38, %v489_v52  ;;  %vm488_vm9 = vcmp.eq.f32.partialorder %v487_v59, 8.507059e+37 }
  0xea   :  { %v472_v61 = vsel %vm469_vm8, %v471_v20, %v467_v60 }
  0xec   :  { %v1725_v56 = vpop.eup %1724 }
  0xed   :  { %v1727_v1 = vpop.eup %1726  ;;  %v497_v57 = vadd.f32 1.0, %v1725_v56 }
  0xee   :  { %v479_v62 = vmul.f32 %v1727_v1, %v477_v9  ;;  %vm484_vm4 = vweird.f32 %v1727_v1  ;;  %v1729_v8 = vpop.eup %1728 }
  0xef   :  { %1730 = vrcp.f32 %v497_v57  ;;  %vm485_vm7 = vmor %vm483_vm6, %vm484_vm4  ;;  %v509_v9 = vand.u32 2147483648, %v497_v57  ;;  %vm503_vm11 = vweird.f32 %v497_v57  ;;  %v507_v6 = vand.u32 2147483647, %v497_v57 }
  0xf0   :  { %v480_v4 = vsub.f32 1.0, %v479_v62 }
  0xf1   :  { %vm508_vm13 = vcmp.eq.f32.partialorder %v507_v6, 8.507059e+37 }
  0xf2   :  { %v481_v58 = vmul.f32 %v1727_v1, %v480_v4  ;;  %v514_v4 = vmul.f32 %v1729_v8, %v472_v61 }
  0xf4   :  { %v482_v2 = vadd.f32 %v1727_v1, %v481_v58 }
  0xf5   :  { %v1731_v0 = vpop.eup %1730 }
  0xf6   :  { %v486_v5 = vsel %vm485_vm7, %v1727_v1, %v482_v2  ;;  %v499_v56 = vmul.f32 %v1731_v0, %v497_v57  ;;  %vm504_vm10 = vweird.f32 %v1731_v0  ;;  %v510_v1 = vor.u32 1.1754944e-38, %v509_v9  ;;  %v3211_v2 = vld [vmem:[#allocation38_spill] sm:$0xff] }
  0xf7   :  { %v491_v62 = vsel %vm488_vm9, %v490_v46, %v486_v5  ;;  %vm505_vm12 = vmor %vm503_vm11, %vm504_vm10 }
  0xf8   :  { %v513_v10 = vmul.f32 0.0, %v491_v62  ;;  %v500_v7 = vsub.f32 1.0, %v499_v56 }
  0xfa   :  { %v2467_v55 = vadd.f32 %v514_v4, %v513_v10  ;;  %v501_v53 = vmul.f32 %v1731_v0, %v500_v7 }
  0xfc   :  { %1732 = vtanh.f32 %v2467_v55  ;;  %v502_v63 = vadd.f32 %v1731_v0, %v501_v53 }
  0xfe   :  { %v506_v52 = vsel %vm505_vm12, %v1731_v0, %v502_v63 }
  0xff   :  { %v511_v33 = vsel %vm508_vm13, %v510_v1, %v506_v52 }
 0x102   :  { %v1733_v59 = vpop.eup %1732 }
 0x103   :  { %v517_v58 = vmul.f32 %v1733_v59, %v511_v33 }
 0x105   :  { %541 = vmatmul.f32.vlgmr.msra.gmra.mxu0 %v517_v58  ;;  %561 = vmatmul.f32.vlgmr.msrb.gmra.mxu1 %v517_v58 }
 0x106   :  { %581 = vmatmul.f32.vlgmr.msrb.gmra.mxu2 %v517_v58  ;;  %601 = vmatmul.f32.vlgmr.msrb.gmra.mxu3 %v517_v58 }
 0x107   :  { %833 = vmatpush.msra.mxu0 %v2018_v12  ;;  %853 = vmatpush.msrb.mxu1 %v2012_v11  ;;  %v3183_v11 = vld [vmem:[#allocation8_spill] sm:$0xff]  ;;  %v3184_v12 = vld [vmem:[#allocation9_spill] sm:$0xff] }
 0x108   :  { %873 = vmatpush.msrb.mxu2 %v2026_v15  ;;  %893 = vmatpush.msrb.mxu3 %v2020_v13  ;;  %v3185_v13 = vld [vmem:[#allocation7_spill] sm:$0xff] }
 0x109   :  { %834 = vmatpush.msra.mxu0 %v2030_v16  ;;  %854 = vmatpush.msrb.mxu1 %v2024_v14  ;;  %v3186_v14 = vld [vmem:[#allocation12_spill] sm:$0xff]  ;;  %v3187_v15 = vld [vmem:[#allocation11_spill] sm:$0xff]  ;;  %v3188_v16 = vld [vmem:[#allocation13_spill] sm:$0xff] }
 0x10a   :  { %874 = vmatpush.msrb.mxu2 %v2038_v19  ;;  %894 = vmatpush.msrb.mxu3 %v2032_v17  ;;  %v3189_v17 = vld [vmem:[#allocation10_spill] sm:$0xff]  ;;  %v3191_v19 = vld [vmem:[#allocation16_spill] sm:$0xff] }
 0x10b   :  { %835 = vmatpush.msra.mxu0 %v2047_v21  ;;  %855 = vmatpush.msrb.mxu1 %v2036_v18  ;;  %v3190_v18 = vld [vmem:[#allocation18_spill] sm:$0xff] }
 0x10c   :  { %875 = vmatpush.msrb.mxu2 %v2057_v24  ;;  %895 = vmatpush.msrb.mxu3 %v2055_v23  ;;  %v3192_v21 = vld [vmem:[#allocation14_spill] sm:$0xff]  ;;  %v3195_v24 = vld [vmem:[#allocation20_spill] sm:$0xff] }
 0x10d   :  { %836 = vmatpush.msra.mxu0 %v2061_v25  ;;  %856 = vmatpush.msrb.mxu1 %v2050_v22  ;;  %v3193_v22 = vld [vmem:[#allocation15_spill] sm:$0xff]  ;;  %v3194_v23 = vld [vmem:[#allocation22_spill] sm:$0xff]  ;;  %v3196_v25 = vld [vmem:[#allocation17_spill] sm:$0xff] }
 0x10e   :  { %876 = vmatpush.msrb.mxu2 %v2069_v28  ;;  %896 = vmatpush.msrb.mxu3 %v2067_v27  ;;  %v3198_v27 = vld [vmem:[#allocation26_spill] sm:$0xff]  ;;  %v3199_v28 = vld [vmem:[#allocation24_spill] sm:$0xff] }
 0x10f   :  { %837 = vmatpush.msra.mxu0 %v2071_v29  ;;  %857 = vmatpush.msrb.mxu1 %v2063_v26  ;;  %v3197_v26 = vld [vmem:[#allocation19_spill] sm:$0xff]  ;;  %v3200_v29 = vld [vmem:[#allocation21_spill] sm:$0xff] }
 0x110   :  { %877 = vmatpush.msrb.mxu2 %v2081_v32  ;;  %897 = vmatpush.msrb.mxu3 %v2079_v31  ;;  %v3202_v31 = vld [vmem:[#allocation29_spill] sm:$0xff]  ;;  %v3203_v32 = vld [vmem:[#allocation28_spill] sm:$0xff] }
 0x111   :  { %838 = vmatpush.msra.mxu0 %v2090_v34  ;;  %858 = vmatpush.msrb.mxu1 %v2074_v30  ;;  %v3201_v30 = vld [vmem:[#allocation23_spill] sm:$0xff]  ;;  %v3204_v34 = vld [vmem:[#allocation25_spill] sm:$0xff] }
 0x112   :  { %878 = vmatpush.msrb.mxu2 %v2100_v37  ;;  %898 = vmatpush.msrb.mxu3 %v2098_v36  ;;  %v3206_v36 = vld [vmem:[#allocation31_spill] sm:$0xff]  ;;  %v3207_v37 = vld [vmem:[#allocation30_spill] sm:$0xff] }
 0x113   :  { %839 = vmatpush.msra.mxu0 %v2104_v38  ;;  %859 = vmatpush.msrb.mxu1 %v2093_v35  ;;  %v3205_v35 = vld [vmem:[#allocation27_spill] sm:$0xff] }
 0x114   :  { %879 = vmatpush.msrb.mxu2 %v2112_v41  ;;  %899 = vmatpush.msrb.mxu3 %v2110_v40  ;;  %v3208_v40 = vld [vmem:[#allocation35_spill] sm:$0xff] }
 0x115   :  { %840 = vmatpush.msra.mxu0 %v2114_v42  ;;  %860 = vmatpush.msrb.mxu1 %v2106_v39  ;;  %v3209_v42 = vld [vmem:[#allocation37_spill] sm:$0xff] }
 0x116   :  { %880 = vmatpush.msrb.mxu2 %v2124_v45  ;;  %900 = vmatpush.msrb.mxu3 %v2122_v44 }
 0x117   :  { %841 = vmatpush.msra.mxu0 %v2133_v47  ;;  %861 = vmatpush.msrb.mxu1 %v2117_v43 }
 0x118   :  { %881 = vmatpush.msrb.mxu2 %v2143_v50  ;;  %901 = vmatpush.msrb.mxu3 %v2141_v49 }
 0x119   :  { %842 = vmatpush.msra.mxu0 %v2147_v51  ;;  %862 = vmatpush.msrb.mxu1 %v2136_v48  ;;  %v3210_v48 = vld [vmem:[#allocation39_spill] sm:$0xff] }
 0x11a   :  { %882 = vmatpush.msrb.mxu2 %v2155_v54  ;;  %902 = vmatpush.msrb.mxu3 %v3183_v11 }
 0x11b   :  { %843 = vmatpush.msra.mxu0 %v3184_v12  ;;  %863 = vmatpush.msrb.mxu1 %v3185_v13 }
 0x11c   :  { %883 = vmatpush.msrb.mxu2 %v3186_v14  ;;  %903 = vmatpush.msrb.mxu3 %v3187_v15 }
 0x11d   :  { %844 = vmatpush.msra.mxu0 %v3188_v16  ;;  %864 = vmatpush.msrb.mxu1 %v3189_v17 }
 0x11e   :  { %884 = vmatpush.msrb.mxu2 %v3190_v18  ;;  %904 = vmatpush.msrb.mxu3 %v3191_v19 }
 0x11f   :  { %845 = vmatpush.msra.mxu0 %v3192_v21  ;;  %865 = vmatpush.msrb.mxu1 %v3193_v22 }
 0x120   :  { %885 = vmatpush.msrb.mxu2 %v3194_v23  ;;  %905 = vmatpush.msrb.mxu3 %v3195_v24 }
 0x121   :  { %846 = vmatpush.msra.mxu0 %v3196_v25  ;;  %866 = vmatpush.msrb.mxu1 %v3197_v26 }
 0x122   :  { %886 = vmatpush.msrb.mxu2 %v3198_v27  ;;  %906 = vmatpush.msrb.mxu3 %v3199_v28 }
 0x123   :  { %847 = vmatpush.msra.mxu0 %v3200_v29  ;;  %867 = vmatpush.msrb.mxu1 %v3201_v30 }
 0x124   :  { %887 = vmatpush.msrb.mxu2 %v3202_v31  ;;  %907 = vmatpush.msrb.mxu3 %v3203_v32 }
 0x125   :  { %848 = vmatpush.msra.mxu0 %v3204_v34  ;;  %868 = vmatpush.msrb.mxu1 %v3205_v35 }
 0x126   :  { %888 = vmatpush.msrb.mxu2 %v3206_v36  ;;  %908 = vmatpush.msrb.mxu3 %v3207_v37 }
 0x182   :  { %v542_v38 = vpop.f32.mrf.mxu0  ;;  %v562_v39 = vpop.f32.mrf.mxu1 }
 0x183   :  { %v605_v41 = vadd.f32 %v542_v38, %v3208_v40  ;;  %v606_v43 = vadd.f32 %v562_v39, %v3209_v42  ;;  %v2545_v42 = vld [vmem:[#allocation4 + $0x1e8] sm:$0xff] }
 0x185   :  { %v1689_v44 = vmul.f32 -1.442695, %v605_v41  ;;  %v1690_v45 = vmul.f32 -1.442695, %v606_v43  ;;  %v2548_v43 = vld [vmem:[#allocation4 + $0x1f0] sm:$0xff] }
 0x187   :  { %1734 = vpow2.f32 %v1689_v44  ;;  %v2551_v44 = vld [vmem:[#allocation4 + $0x1f8] sm:$0xff] }
 0x188   :  { %1736 = vpow2.f32 %v1690_v45  ;;  %v2554_v45 = vld [vmem:[#allocation4 + $0x1c0] sm:$0xff] }
 0x189   :  { %v602_v47 = vpop.f32.mrf.mxu3  ;;  %v582_v57 = vpop.f32.mrf.mxu2 }
 0x18a   :  { %v608_v49 = vadd.f32 %v602_v47, %v3210_v48  ;;  %v607_v0 = vadd.f32 %v582_v57, %v3211_v2  ;;  %v2557_v47 = vld [vmem:[#allocation4 + $0x1c8] sm:$0xff]  ;;  %v2560_v48 = vld [vmem:[#allocation4 + $0x1d0] sm:$0xff] }
 0x18b   :  { %v2581_v57 = vld [vmem:[#allocation4 + $0x188] sm:$0xff] }
 0x18c   :  { %v1691_v50 = vmul.f32 -1.442695, %v608_v49  ;;  %v2563_v49 = vld [vmem:[#allocation4 + $0x1d8] sm:$0xff]  ;;  %v2593_v2 = vld [vmem:[#allocation4 + $0x168] sm:$0xff] }
 0x18d   :  { %v1735_v51 = vpop.eup %1734 }
 0x18e   :  { %v1737_v53 = vpop.eup %1736  ;;  %v612_v54 = vadd.f32 1.0, %v1735_v51  ;;  %1738 = vpow2.f32 %v1691_v50  ;;  %v2566_v50 = vld [vmem:[#allocation4 + $0x1a0] sm:$0xff]  ;;  %v2569_v51 = vld [vmem:[#allocation4 + $0x1a8] sm:$0xff] }
 0x18f   :  { %v631_v10 = vadd.f32 1.0, %v1737_v53  ;;  %v2572_v53 = vld [vmem:[#allocation4 + $0x1b0] sm:$0xff] }
 0x190   :  { %1740 = vrcp.f32 %v612_v54  ;;  %v624_v62 = vand.u32 2147483648, %v612_v54  ;;  %v622_v63 = vand.u32 2147483647, %v612_v54  ;;  %vm618_vm0 = vweird.f32 %v612_v54 }
 0x191   :  { %1742 = vrcp.f32 %v631_v10  ;;  %v643_v4 = vand.u32 2147483648, %v631_v10  ;;  %v641_v6 = vand.u32 2147483647, %v631_v10  ;;  %vm637_vm1 = vweird.f32 %v631_v10 }
 0x192   :  { %v625_v59 = vor.u32 1.1754944e-38, %v624_v62  ;;  %vm623_vm4 = vcmp.eq.f32.partialorder %v622_v63, 8.507059e+37  ;;  %v2614_v62 = vld [vmem:[#allocation4 + $0x120] sm:$0xff]  ;;  %v2623_v63 = vld [vmem:[#allocation4 + $0x138] sm:$0xff] }
 0x193   :  { %v644_v11 = vor.u32 1.1754944e-38, %v643_v4  ;;  %vm642_vm5 = vcmp.eq.f32.partialorder %v641_v6, 8.507059e+37  ;;  %v2617_v4 = vld [vmem:[#allocation4 + $0x128] sm:$0xff] }
 0x194   :  { %v1739_v3 = vpop.eup %1738  ;;  %v2629_v6 = vld [vmem:[#allocation4 + $0x108] sm:$0xff] }
 0x195   :  { %v651_v8 = vadd.f32 1.0, %v1739_v3  ;;  %v2584_v3 = vld [vmem:[#allocation4 + $0x190] sm:$0xff] }
 0x196   :  { %v1741_v60 = vpop.eup %1740 }
 0x197   :  { %v1743_v46 = vpop.eup %1742  ;;  %v614_v20 = vmul.f32 %v1741_v60, %v612_v54  ;;  %1744 = vrcp.f32 %v651_v8  ;;  %vm619_vm14 = vweird.f32 %v1741_v60  ;;  %v663_v26 = vand.u32 2147483648, %v651_v8  ;;  %v2575_v54 = vld [vmem:[#allocation4 + $0x1b8] sm:$0xff] }
 0x198   :  { %v633_v5 = vmul.f32 %v1743_v46, %v631_v10  ;;  %1746 = vtanh.f32 %v607_v0  ;;  %vm638_vm15 = vweird.f32 %v1743_v46  ;;  %vm620_vm2 = vmor %vm618_vm0, %vm619_vm14  ;;  %vm657_vm7 = vweird.f32 %v651_v8  ;;  %v2578_v10 = vld [vmem:[#allocation4 + $0x180] sm:$0xff]  ;;  %v2596_v0 = vld [vmem:[#allocation4 + $0x170] sm:$0xff] }
 0x199   :  { %v615_v56 = vsub.f32 1.0, %v614_v20  ;;  %vm639_vm3 = vmor %vm637_vm1, %vm638_vm15  ;;  %v661_v29 = vand.u32 2147483647, %v651_v8  ;;  %v664_v38 = vor.u32 1.1754944e-38, %v663_v26  ;;  %v2602_v20 = vld [vmem:[#allocation4 + $0x140] sm:$0xff]  ;;  %v2681_v26 = vld [vmem:[#allocation4 + $0x98] sm:$0xff] }
 0x19a   :  { %v634_v61 = vsub.f32 1.0, %v633_v5  ;;  %v2605_v5 = vld [vmem:[#allocation4 + $0x148] sm:$0xff]  ;;  %3220 = vst [vmem:[#allocation16_spill] sm:$0xff] %v2681_v26 }
 0x19b   :  { %v616_v7 = vmul.f32 %v1741_v60, %v615_v56  ;;  %vm662_vm9 = vcmp.eq.f32.partialorder %v661_v29, 8.507059e+37  ;;  %v2608_v56 = vld [vmem:[#allocation4 + $0x150] sm:$0xff]  ;;  %v2684_v29 = vld [vmem:[#allocation4 + $0x60] sm:$0xff] }
 0x19c   :  { %v635_v9 = vmul.f32 %v1743_v46, %v634_v61  ;;  %v2611_v61 = vld [vmem:[#allocation4 + $0x158] sm:$0xff]  ;;  %3221 = vst [vmem:[#allocation14_spill] sm:$0xff] %v2684_v29 }
 0x19d   :  { %v1745_v52 = vpop.eup %1744  ;;  %v617_v1 = vadd.f32 %v1741_v60, %v616_v7  ;;  %v2620_v7 = vld [vmem:[#allocation4 + $0x130] sm:$0xff] }
 0x19e   :  { %v636_v33 = vadd.f32 %v1743_v46, %v635_v9  ;;  %v653_v58 = vmul.f32 %v1745_v52, %v651_v8  ;;  %v1747_v13 = vpop.eup %1746  ;;  %vm658_vm6 = vweird.f32 %v1745_v52  ;;  %v2587_v8 = vld [vmem:[#allocation4 + $0x198] sm:$0xff]  ;;  %v2626_v9 = vld [vmem:[#allocation4 + $0x100] sm:$0xff] }
 0x19f   :  { %v621_v12 = vsel %vm620_vm2, %v1741_v60, %v617_v1  ;;  %vm659_vm8 = vmor %vm657_vm7, %vm658_vm6  ;;  %v2590_v60 = vld [vmem:[#allocation4 + $0x160] sm:$0xff]  ;;  %v2635_v1 = vld [vmem:[#allocation4 + $0x118] sm:$0xff] }
 0x1a0   :  { %v626_v14 = vsel %vm623_vm4, %v625_v59, %v621_v12  ;;  %v640_v15 = vsel %vm639_vm3, %v1743_v46, %v636_v33  ;;  %v654_v16 = vsub.f32 1.0, %v653_v58  ;;  %v2599_v46 = vld [vmem:[#allocation4 + $0x178] sm:$0xff]  ;;  %v2638_v59 = vld [vmem:[#allocation4 + $0xe0] sm:$0xff]  ;;  %v2641_v33 = vld [vmem:[#allocation4 + $0xe8] sm:$0xff] }
 0x1a1   :  { %v645_v17 = vsel %vm642_vm5, %v644_v11, %v640_v15  ;;  %v668_v19 = vmul.f32 %v1747_v13, %v626_v14  ;;  %v2644_v58 = vld [vmem:[#allocation4 + $0xf0] sm:$0xff]  ;;  %v2647_v11 = vld [vmem:[#allocation4 + $0xf8] sm:$0xff]  ;;  %v2650_v12 = vld [vmem:[#allocation4 + $0xc0] sm:$0xff] }
 0x1a2   :  { %v667_v21 = vmul.f32 %v645_v17, %v2467_v55  ;;  %v655_v22 = vmul.f32 %v1745_v52, %v654_v16  ;;  %v2542_v55 = vld [vmem:[#allocation4 + $0x1e0] sm:$0xff]  ;;  %v2653_v13 = vld [vmem:[#allocation4 + $0xc8] sm:$0xff]  ;;  %v2656_v14 = vld [vmem:[#allocation4 + $0xd0] sm:$0xff] }
 0x1a3   :  { %3212 = vst [vmem:[#allocation8_spill] sm:$0xff] %v2656_v14  ;;  %v2659_v15 = vld [vmem:[#allocation4 + $0xd8] sm:$0xff]  ;;  %v2662_v16 = vld [vmem:[#allocation4 + $0xa0] sm:$0xff]  ;;  %v2665_v17 = vld [vmem:[#allocation4 + $0xa8] sm:$0xff] }
 0x1a4   :  { %v2539_v24 = vadd.f32 %v668_v19, %v667_v21  ;;  %v656_v25 = vadd.f32 %v1745_v52, %v655_v22  ;;  %3213 = vst [vmem:[#allocation9_spill] sm:$0xff] %v2659_v15  ;;  %v2668_v19 = vld [vmem:[#allocation4 + $0xb0] sm:$0xff]  ;;  %v2671_v21 = vld [vmem:[#allocation4 + $0xb8] sm:$0xff]  ;;  %v2674_v22 = vld [vmem:[#allocation4 + $0x80] sm:$0xff] }
 0x1a5   :  { %3214 = vst [vmem:[#allocation7_spill] sm:$0xff] %v2662_v16 }
 0x1a6   :  { %1748 = vtanh.f32 %v2539_v24  ;;  %v660_v34 = vsel %vm659_vm8, %v1745_v52, %v656_v25  ;;  %v2632_v52 = vld [vmem:[#allocation4 + $0x110] sm:$0xff]  ;;  %3215 = vst [vmem:[#allocation12_spill] sm:$0xff] %v2665_v17  ;;  %v2677_v25 = vld [vmem:[#allocation4 + $0x88] sm:$0xff] }
 0x1a7   :  { %v665_v40 = vsel %vm662_vm9, %v664_v38, %v660_v34  ;;  %3216 = vst [vmem:[#allocation11_spill] sm:$0xff] %v2668_v19  ;;  %v2687_v34 = vld [vmem:[#allocation4 + $0x68] sm:$0xff]  ;;  %v2691_v38 = vld [vmem:[#allocation4 + $0x78] sm:$0xff] }
 0x1a8   :  { %3217 = vst [vmem:[#allocation13_spill] sm:$0xff] %v2671_v21 }
 0x1a9   :  { %3218 = vst [vmem:[#allocation10_spill] sm:$0xff] %v2674_v22 }
 0x1aa   :  { %3219 = vst [vmem:[#allocation18_spill] sm:$0xff] %v2677_v25 }
 0x1ab   :  { %3222 = vst [vmem:[#allocation15_spill] sm:$0xff] %v2687_v34 }
 0x1ac   :  { %v1749_v39 = vpop.eup %1748  ;;  %3223 = vst [vmem:[#allocation22_spill] sm:$0xff] %v2691_v38 }
 0x1ad   :  { %v671_v41 = vmul.f32 %v1749_v39, %v665_v40  ;;  %v2694_v39 = vld [vmem:[#allocation4 + $0x40] sm:$0xff] }
 0x1ae   :  { %3224 = vst [vmem:[#allocation20_spill] sm:$0xff] %v2694_v39  ;;  %v2702_v40 = vld [vmem:[#allocation4 + $0x20] sm:$0xff] }
 0x1af   :  { %695 = vmatmul.f32.vlgmr.msrb.gmra.mxu0 %v671_v41  ;;  %715 = vmatmul.f32.vlgmr.msra.gmra.mxu1 %v671_v41  ;;  %3226 = vst [vmem:[#allocation19_spill] sm:$0xff] %v2702_v40 }
 0x1b0   :  { %735 = vmatmul.f32.vlgmr.msra.gmra.mxu2 %v671_v41  ;;  %755 = vmatmul.f32.vlgmr.msra.gmra.mxu3 %v671_v41  ;;  %v3228_v41 = vld [vmem:[#allocation36_spill] sm:$0xff] }
 0x1b1   :  { %987 = vmatpush.msrb.mxu0 %v2542_v55  ;;  %1007 = vmatpush.msra.mxu1 %v2545_v42 }
 0x1b2   :  { %1027 = vmatpush.msra.mxu2 %v2548_v43  ;;  %1047 = vmatpush.msra.mxu3 %v2551_v44 }
 0x1b3   :  { %988 = vmatpush.msrb.mxu0 %v2554_v45  ;;  %1008 = vmatpush.msra.mxu1 %v2557_v47 }
 0x1b4   :  { %1028 = vmatpush.msra.mxu2 %v2560_v48  ;;  %1048 = vmatpush.msra.mxu3 %v2563_v49 }
 0x1b5   :  { %989 = vmatpush.msrb.mxu0 %v2566_v50  ;;  %1009 = vmatpush.msra.mxu1 %v2569_v51 }
 0x1b6   :  { %1029 = vmatpush.msra.mxu2 %v2572_v53  ;;  %1049 = vmatpush.msra.mxu3 %v2575_v54 }
 0x1b7   :  { %990 = vmatpush.msrb.mxu0 %v2578_v10  ;;  %1010 = vmatpush.msra.mxu1 %v2581_v57 }
 0x1b8   :  { %1030 = vmatpush.msra.mxu2 %v2584_v3  ;;  %1050 = vmatpush.msra.mxu3 %v2587_v8 }
 0x1b9   :  { %991 = vmatpush.msrb.mxu0 %v2590_v60  ;;  %1011 = vmatpush.msra.mxu1 %v2593_v2 }
 0x1ba   :  { %1031 = vmatpush.msra.mxu2 %v2596_v0  ;;  %1051 = vmatpush.msra.mxu3 %v2599_v46 }
 0x1bb   :  { %992 = vmatpush.msrb.mxu0 %v2602_v20  ;;  %1012 = vmatpush.msra.mxu1 %v2605_v5 }
 0x1bc   :  { %1032 = vmatpush.msra.mxu2 %v2608_v56  ;;  %1052 = vmatpush.msra.mxu3 %v2611_v61 }
 0x1bd   :  { %993 = vmatpush.msrb.mxu0 %v2614_v62  ;;  %1013 = vmatpush.msra.mxu1 %v2617_v4 }
 0x1be   :  { %1033 = vmatpush.msra.mxu2 %v2620_v7  ;;  %1053 = vmatpush.msra.mxu3 %v2623_v63 }
 0x1bf   :  { %994 = vmatpush.msrb.mxu0 %v2626_v9  ;;  %1014 = vmatpush.msra.mxu1 %v2629_v6 }
 0x1c0   :  { %1034 = vmatpush.msra.mxu2 %v2632_v52  ;;  %1054 = vmatpush.msra.mxu3 %v2635_v1 }
 0x1c1   :  { %995 = vmatpush.msrb.mxu0 %v2638_v59  ;;  %1015 = vmatpush.msra.mxu1 %v2641_v33 }
 0x1c2   :  { %1035 = vmatpush.msra.mxu2 %v2644_v58  ;;  %1055 = vmatpush.msra.mxu3 %v2647_v11 }
 0x1c3   :  { %996 = vmatpush.msrb.mxu0 %v2650_v12  ;;  %1016 = vmatpush.msra.mxu1 %v2653_v13 }
 0x1c4   :  { %1036 = vmatpush.msra.mxu2 %v2656_v14  ;;  %1056 = vmatpush.msra.mxu3 %v2659_v15 }
 0x1c5   :  { %997 = vmatpush.msrb.mxu0 %v2662_v16  ;;  %1017 = vmatpush.msra.mxu1 %v2665_v17 }
 0x1c6   :  { %1037 = vmatpush.msra.mxu2 %v2668_v19  ;;  %1057 = vmatpush.msra.mxu3 %v2671_v21 }
 0x1c7   :  { %998 = vmatpush.msrb.mxu0 %v2674_v22  ;;  %1018 = vmatpush.msra.mxu1 %v2677_v25 }
 0x1c8   :  { %1038 = vmatpush.msra.mxu2 %v3190_v18  ;;  %1058 = vmatpush.msra.mxu3 %v2681_v26  ;;  %v2697_v18 = vld [vmem:[#allocation4 + $0x48] sm:$0xff] }
 0x1c9   :  { %999 = vmatpush.msrb.mxu0 %v2684_v29  ;;  %1019 = vmatpush.msra.mxu1 %v2687_v34  ;;  %3225 = vst [vmem:[#allocation17_spill] sm:$0xff] %v2697_v18 }
 0x1ca   :  { %1039 = vmatpush.msra.mxu2 %v3194_v23  ;;  %1059 = vmatpush.msra.mxu3 %v2691_v38  ;;  %v2708_v23 = vld [vmem:[#allocation4] sm:$0xff] }
 0x1cb   :  { %1000 = vmatpush.msrb.mxu0 %v2694_v39  ;;  %1020 = vmatpush.msra.mxu1 %v2697_v18  ;;  %3227 = vst [vmem:[#allocation26_spill] sm:$0xff] %v2708_v23  ;;  %v3229_v18 = vld [vmem:[#allocation41_spill] sm:$0xff]  ;;  %v3230_v38 = vld [vmem:[#allocation43_spill] sm:$0xff] }
 0x1cc   :  { %1040 = vmatpush.msra.mxu2 %v3198_v27  ;;  %1060 = vmatpush.msra.mxu3 %v3199_v28 }
 0x1cd   :  { %1001 = vmatpush.msrb.mxu0 %v2702_v40  ;;  %1021 = vmatpush.msra.mxu1 %v3201_v30 }
 0x1ce   :  { %1041 = vmatpush.msra.mxu2 %v3202_v31  ;;  %1061 = vmatpush.msra.mxu3 %v3203_v32 }
 0x1cf   :  { %1002 = vmatpush.msrb.mxu0 %v2708_v23  ;;  %1022 = vmatpush.msra.mxu1 %v3205_v35 }
 0x1d0   :  { %1042 = vmatpush.msra.mxu2 %v3206_v36  ;;  %1062 = vmatpush.msra.mxu3 %v3207_v37 }
 0x22c   :  { %v696_v27 = vpop.f32.mrf.mxu0  ;;  %v716_v28 = vpop.f32.mrf.mxu1 }
 0x22d   :  { %v759_v40 = vadd.f32 %v696_v27, %v3228_v41  ;;  %v760_v30 = vadd.f32 %v716_v28, %v3229_v18  ;;  %v3231_v18 = vld [vmem:[#allocation42_spill] sm:$0xff] }
 0x22f   :  { %v1692_v39 = vmul.f32 -1.442695, %v759_v40  ;;  %v1693_v31 = vmul.f32 -1.442695, %v760_v30 }
 0x231   :  { %1750 = vpow2.f32 %v1692_v39 }
 0x232   :  { %1752 = vpow2.f32 %v1693_v31 }
 0x233   :  { %v756_v32 = vpop.f32.mrf.mxu3  ;;  %v736_v37 = vpop.f32.mrf.mxu2 }
 0x234   :  { %v762_v34 = vadd.f32 %v756_v32, %v3230_v38  ;;  %v761_v40 = vadd.f32 %v736_v37, %v3231_v18 }
 0x236   :  { %v1694_v23 = vmul.f32 -1.442695, %v762_v34 }
 0x237   :  { %v1751_v29 = vpop.eup %1750 }
 0x238   :  { %v1753_v35 = vpop.eup %1752  ;;  %v766_v26 = vadd.f32 1.0, %v1751_v29  ;;  %1754 = vpow2.f32 %v1694_v23 }
 0x239   :  { %v785_v36 = vadd.f32 1.0, %v1753_v35 }
 0x23a   :  { %1756 = vrcp.f32 %v766_v26  ;;  %v778_v34 = vand.u32 2147483648, %v766_v26  ;;  %v776_v23 = vand.u32 2147483647, %v766_v26  ;;  %vm772_vm12 = vweird.f32 %v766_v26 }
 0x23b   :  { %1758 = vrcp.f32 %v785_v36  ;;  %v797_v32 = vand.u32 2147483648, %v785_v36  ;;  %v795_v22 = vand.u32 2147483647, %v785_v36  ;;  %vm791_vm13 = vweird.f32 %v785_v36 }
 0x23c   :  { %v779_v37 = vor.u32 1.1754944e-38, %v778_v34  ;;  %vm777_vm0 = vcmp.eq.f32.partialorder %v776_v23, 8.507059e+37 }
 0x23d   :  { %vm796_vm1 = vcmp.eq.f32.partialorder %v795_v22, 8.507059e+37 }
 0x23e   :  { %v1755_v25 = vpop.eup %1754 }
 0x23f   :  { %v805_v27 = vadd.f32 1.0, %v1755_v25 }
 0x240   :  { %v1757_v41 = vpop.eup %1756 }
 0x241   :  { %v1759_v28 = vpop.eup %1758  ;;  %v768_v39 = vmul.f32 %v1757_v41, %v766_v26  ;;  %1760 = vrcp.f32 %v805_v27  ;;  %vm773_vm10 = vweird.f32 %v1757_v41  ;;  %v817_v34 = vand.u32 2147483648, %v805_v27 }
 0x242   :  { %v787_v30 = vmul.f32 %v1759_v28, %v785_v36  ;;  %1762 = vtanh.f32 %v761_v40  ;;  %vm792_vm11 = vweird.f32 %v1759_v28  ;;  %vm774_vm14 = vmor %vm772_vm12, %vm773_vm10  ;;  %vm811_vm3 = vweird.f32 %v805_v27 }
 0x243   :  { %v769_v31 = vsub.f32 1.0, %v768_v39  ;;  %vm793_vm15 = vmor %vm791_vm13, %vm792_vm11  ;;  %v798_v39 = vor.u32 1.1754944e-38, %v797_v32  ;;  %v818_v23 = vor.u32 1.1754944e-38, %v817_v34  ;;  %v3250_v34 = vld [vmem:[#allocation19_spill] sm:$0xff] }
 0x244   :  { %v788_v38 = vsub.f32 1.0, %v787_v30 }
 0x245   :  { %v770_v29 = vmul.f32 %v1757_v41, %v769_v31 }
 0x246   :  { %v789_v35 = vmul.f32 %v1759_v28, %v788_v38 }
 0x247   :  { %v1761_v21 = vpop.eup %1760  ;;  %v771_v25 = vadd.f32 %v1757_v41, %v770_v29 }
 0x248   :  { %v790_v18 = vadd.f32 %v1759_v28, %v789_v35  ;;  %v807_v19 = vmul.f32 %v1761_v21, %v805_v27  ;;  %v1763_v40 = vpop.eup %1762  ;;  %vm812_vm2 = vweird.f32 %v1761_v21  ;;  %v3239_v35 = vld [vmem:[#allocation18_spill] sm:$0xff] }
 0x249   :  { %v775_v30 = vsel %vm774_vm14, %v1757_v41, %v771_v25  ;;  %v815_v41 = vand.u32 2147483647, %v805_v27  ;;  %vm813_vm4 = vmor %vm811_vm3, %vm812_vm2  ;;  %v3238_v27 = vld [vmem:[#allocation10_spill] sm:$0xff]  ;;  %v2768_v25 = vld [vmem:[#allocation4 + $0x90] sm:$0xff] }
 0x24a   :  { %v780_v17 = vsel %vm777_vm0, %v779_v37, %v775_v30  ;;  %v794_v31 = vsel %vm793_vm15, %v1759_v28, %v790_v18  ;;  %v808_v16 = vsub.f32 1.0, %v807_v19  ;;  %3240 = vst [vmem:[#allocation24_spill] sm:$0xff] %v2768_v25  ;;  %v3241_v37 = vld [vmem:[#allocation16_spill] sm:$0xff]  ;;  %v3242_v18 = vld [vmem:[#allocation14_spill] sm:$0xff]  ;;  %v2774_v30 = vld [vmem:[#allocation4 + $0x70] sm:$0xff] }
 0x24b   :  { %v799_v38 = vsel %vm796_vm1, %v798_v39, %v794_v31  ;;  %v822_v15 = vmul.f32 %v1763_v40, %v780_v17  ;;  %vm816_vm5 = vcmp.eq.f32.partialorder %v815_v41, 8.507059e+37  ;;  %v3236_v17 = vld [vmem:[#allocation11_spill] sm:$0xff]  ;;  %3244 = vst [vmem:[#allocation21_spill] sm:$0xff] %v2774_v30  ;;  %v3245_v40 = vld [vmem:[#allocation22_spill] sm:$0xff]  ;;  %v3246_v31 = vld [vmem:[#allocation20_spill] sm:$0xff] }
 0x24c   :  { %v821_v14 = vmul.f32 %v799_v38, %v2539_v24  ;;  %v809_v29 = vmul.f32 %v1761_v21, %v808_v16  ;;  %v3232_v24 = vld [vmem:[#allocation8_spill] sm:$0xff]  ;;  %v3243_v39 = vld [vmem:[#allocation15_spill] sm:$0xff]  ;;  %v3247_v38 = vld [vmem:[#allocation17_spill] sm:$0xff] }
 0x24d   :  { %v3235_v16 = vld [vmem:[#allocation12_spill] sm:$0xff] }
 0x24e   :  { %v2719_v26 = vadd.f32 %v822_v15, %v821_v14  ;;  %v810_v36 = vadd.f32 %v1761_v21, %v809_v29  ;;  %v3233_v14 = vld [vmem:[#allocation9_spill] sm:$0xff]  ;;  %v3234_v15 = vld [vmem:[#allocation7_spill] sm:$0xff]  ;;  %v2787_v41 = vld [vmem:[#allocation4 + $0x28] sm:$0xff] }
 0x24f   :  { %v2780_v29 = vld [vmem:[#allocation4 + $0x50] sm:$0xff]  ;;  %3251 = vst [vmem:[#allocation28_spill] sm:$0xff] %v2787_v41 }
 0x250   :  { %1764 = vtanh.f32 %v2719_v26  ;;  %v814_v32 = vsel %vm813_vm4, %v1761_v21, %v810_v36  ;;  %v3237_v21 = vld [vmem:[#allocation13_spill] sm:$0xff]  ;;  %3248 = vst [vmem:[#allocation23_spill] sm:$0xff] %v2780_v29  ;;  %v2783_v36 = vld [vmem:[#allocation4 + $0x58] sm:$0xff] }
 0x251   :  { %v819_v19 = vsel %vm816_vm5, %v818_v23, %v814_v32  ;;  %3249 = vst [vmem:[#allocation29_spill] sm:$0xff] %v2783_v36  ;;  %v2790_v32 = vld [vmem:[#allocation4 + $0x30] sm:$0xff]  ;;  %v2793_v23 = vld [vmem:[#allocation4 + $0x38] sm:$0xff] }
 0x252   :  { %3252 = vst [vmem:[#allocation25_spill] sm:$0xff] %v2790_v32 }
 0x253   :  { %3253 = vst [vmem:[#allocation27_spill] sm:$0xff] %v2793_v23 }
 0x256   :  { %v1765_v22 = vpop.eup %1764 }
 0x257   :  { %v825_v28 = vmul.f32 %v1765_v22, %v819_v19  ;;  %v3254_v22 = vld [vmem:[#allocation26_spill] sm:$0xff]  ;;  %v2797_v19 = vld [vmem:[#allocation4 + $0x8] sm:$0xff] }
 0x258   :  { %3255 = vst [vmem:[#allocation31_spill] sm:$0xff] %v2797_v19 }
 0x259   :  { %849 = vmatmul.f32.vlgmr.msra.gmra.mxu0 %v825_v28  ;;  %869 = vmatmul.f32.vlgmr.msrb.gmra.mxu1 %v825_v28 }
 0x25a   :  { %889 = vmatmul.f32.vlgmr.msrb.gmra.mxu2 %v825_v28  ;;  %909 = vmatmul.f32.vlgmr.msrb.gmra.mxu3 %v825_v28  ;;  %v2800_v28 = vld [vmem:[#allocation4 + $0x10] sm:$0xff] }
 0x25b   :  { %1141 = vmatpush.msra.mxu0 %v2542_v55  ;;  %1161 = vmatpush.msrb.mxu1 %v2545_v42  ;;  %3256 = vst [vmem:[#allocation30_spill] sm:$0xff] %v2800_v28 }
 0x25c   :  { %1181 = vmatpush.msrb.mxu2 %v2548_v43  ;;  %1201 = vmatpush.msrb.mxu3 %v2551_v44 }
 0x25d   :  { %1142 = vmatpush.msra.mxu0 %v2554_v45  ;;  %1162 = vmatpush.msrb.mxu1 %v2557_v47 }
 0x25e   :  { %1182 = vmatpush.msrb.mxu2 %v2560_v48  ;;  %1202 = vmatpush.msrb.mxu3 %v2563_v49 }
 0x25f   :  { %1143 = vmatpush.msra.mxu0 %v2566_v50  ;;  %1163 = vmatpush.msrb.mxu1 %v2569_v51 }
 0x260   :  { %1183 = vmatpush.msrb.mxu2 %v2572_v53  ;;  %1203 = vmatpush.msrb.mxu3 %v2575_v54 }
 0x261   :  { %1144 = vmatpush.msra.mxu0 %v2578_v10  ;;  %1164 = vmatpush.msrb.mxu1 %v2581_v57 }
 0x262   :  { %1184 = vmatpush.msrb.mxu2 %v2584_v3  ;;  %1204 = vmatpush.msrb.mxu3 %v2587_v8 }
 0x263   :  { %1145 = vmatpush.msra.mxu0 %v2590_v60  ;;  %1165 = vmatpush.msrb.mxu1 %v2593_v2 }
 0x264   :  { %1185 = vmatpush.msrb.mxu2 %v2596_v0  ;;  %1205 = vmatpush.msrb.mxu3 %v2599_v46 }
 0x265   :  { %1146 = vmatpush.msra.mxu0 %v2602_v20  ;;  %1166 = vmatpush.msrb.mxu1 %v2605_v5 }
 0x266   :  { %1186 = vmatpush.msrb.mxu2 %v2608_v56  ;;  %1206 = vmatpush.msrb.mxu3 %v2611_v61 }
 0x267   :  { %1147 = vmatpush.msra.mxu0 %v2614_v62  ;;  %1167 = vmatpush.msrb.mxu1 %v2617_v4 }
 0x268   :  { %1187 = vmatpush.msrb.mxu2 %v2620_v7  ;;  %1207 = vmatpush.msrb.mxu3 %v2623_v63 }
 0x269   :  { %1148 = vmatpush.msra.mxu0 %v2626_v9  ;;  %1168 = vmatpush.msrb.mxu1 %v2629_v6 }
 0x26a   :  { %1188 = vmatpush.msrb.mxu2 %v2632_v52  ;;  %1208 = vmatpush.msrb.mxu3 %v2635_v1 }
 0x26b   :  { %1149 = vmatpush.msra.mxu0 %v2638_v59  ;;  %1169 = vmatpush.msrb.mxu1 %v2641_v33 }
 0x26c   :  { %1189 = vmatpush.msrb.mxu2 %v2644_v58  ;;  %1209 = vmatpush.msrb.mxu3 %v2647_v11 }
 0x26d   :  { %1150 = vmatpush.msra.mxu0 %v2650_v12  ;;  %1170 = vmatpush.msrb.mxu1 %v2653_v13 }
 0x26e   :  { %1190 = vmatpush.msrb.mxu2 %v3232_v24  ;;  %1210 = vmatpush.msrb.mxu3 %v3233_v14 }
 0x26f   :  { %1151 = vmatpush.msra.mxu0 %v3234_v15  ;;  %1171 = vmatpush.msrb.mxu1 %v3235_v16 }
 0x270   :  { %1191 = vmatpush.msrb.mxu2 %v3236_v17  ;;  %1211 = vmatpush.msrb.mxu3 %v3237_v21 }
 0x271   :  { %1152 = vmatpush.msra.mxu0 %v3238_v27  ;;  %1172 = vmatpush.msrb.mxu1 %v3239_v35 }
 0x272   :  { %1192 = vmatpush.msrb.mxu2 %v2768_v25  ;;  %1212 = vmatpush.msrb.mxu3 %v3241_v37 }
 0x273   :  { %1153 = vmatpush.msra.mxu0 %v3242_v18  ;;  %1173 = vmatpush.msrb.mxu1 %v3243_v39 }
 0x274   :  { %1193 = vmatpush.msrb.mxu2 %v2774_v30  ;;  %1213 = vmatpush.msrb.mxu3 %v3245_v40 }
 0x275   :  { %1154 = vmatpush.msra.mxu0 %v3246_v31  ;;  %1174 = vmatpush.msrb.mxu1 %v3247_v38  ;;  %v3259_v38 = vld [vmem:[#allocation44_spill] sm:$0xff] }
 0x276   :  { %1194 = vmatpush.msrb.mxu2 %v2780_v29  ;;  %1214 = vmatpush.msrb.mxu3 %v2783_v36  ;;  %v3258_v36 = vld [vmem:[#allocation40_spill] sm:$0xff] }
 0x277   :  { %1155 = vmatpush.msra.mxu0 %v3250_v34  ;;  %1175 = vmatpush.msrb.mxu1 %v2787_v41  ;;  %v2803_v34 = vld [vmem:[#allocation4 + $0x18] sm:$0xff] }
 0x278   :  { %1195 = vmatpush.msrb.mxu2 %v2790_v32  ;;  %1215 = vmatpush.msrb.mxu3 %v2793_v23  ;;  %3257 = vst [vmem:[#allocation35_spill] sm:$0xff] %v2803_v34 }
 0x279   :  { %1156 = vmatpush.msra.mxu0 %v3254_v22  ;;  %1176 = vmatpush.msrb.mxu1 %v2797_v19  ;;  %v3260_v19 = vld [vmem:[#allocation47_spill] sm:$0xff] }
 0x27a   :  { %1196 = vmatpush.msrb.mxu2 %v2800_v28  ;;  %1216 = vmatpush.msrb.mxu3 %v2803_v34 }
 0x2d6   :  { %v850_v41 = vpop.f32.mrf.mxu0  ;;  %v870_v32 = vpop.f32.mrf.mxu1 }
 0x2d7   :  { %v913_v29 = vadd.f32 %v850_v41, %v3258_v36  ;;  %v914_v23 = vadd.f32 %v870_v32, %v3259_v38  ;;  %v3261_v38 = vld [vmem:[#allocation46_spill] sm:$0xff] }
 0x2d9   :  { %v1695_v31 = vmul.f32 -1.442695, %v913_v29  ;;  %v1696_v22 = vmul.f32 -1.442695, %v914_v23 }
 0x2db   :  { %1766 = vpow2.f32 %v1695_v31 }
 0x2dc   :  { %1768 = vpow2.f32 %v1696_v22 }
 0x2dd   :  { %v910_v40 = vpop.f32.mrf.mxu3  ;;  %v890_v34 = vpop.f32.mrf.mxu2 }
 0x2de   :  { %v916_v30 = vadd.f32 %v910_v40, %v3260_v19  ;;  %v915_v29 = vadd.f32 %v890_v34, %v3261_v38 }
 0x2e0   :  { %v1697_v39 = vmul.f32 -1.442695, %v916_v30 }
 0x2e1   :  { %v1767_v18 = vpop.eup %1766 }
 0x2e2   :  { %v1769_v28 = vpop.eup %1768  ;;  %v920_v37 = vadd.f32 1.0, %v1767_v18  ;;  %1770 = vpow2.f32 %v1697_v39 }
 0x2e3   :  { %v939_v25 = vadd.f32 1.0, %v1769_v28 }
 0x2e4   :  { %1772 = vrcp.f32 %v920_v37  ;;  %v932_v30 = vand.u32 2147483648, %v920_v37  ;;  %v930_v39 = vand.u32 2147483647, %v920_v37  ;;  %vm926_vm8 = vweird.f32 %v920_v37 }
 0x2e5   :  { %1774 = vrcp.f32 %v939_v25  ;;  %v951_v19 = vand.u32 2147483648, %v939_v25  ;;  %v949_v27 = vand.u32 2147483647, %v939_v25  ;;  %vm945_vm9 = vweird.f32 %v939_v25 }
 0x2e6   :  { %v933_v34 = vor.u32 1.1754944e-38, %v932_v30  ;;  %vm931_vm12 = vcmp.eq.f32.partialorder %v930_v39, 8.507059e+37 }
 0x2e7   :  { %vm950_vm13 = vcmp.eq.f32.partialorder %v949_v27, 8.507059e+37 }
 0x2e8   :  { %v1771_v35 = vpop.eup %1770 }
 0x2e9   :  { %v959_v36 = vadd.f32 1.0, %v1771_v35 }
 0x2ea   :  { %v1773_v41 = vpop.eup %1772 }
 0x2eb   :  { %v1775_v32 = vpop.eup %1774  ;;  %v922_v31 = vmul.f32 %v1773_v41, %v920_v37  ;;  %1776 = vrcp.f32 %v959_v36  ;;  %vm927_vm6 = vweird.f32 %v1773_v41  ;;  %v971_v30 = vand.u32 2147483648, %v959_v36 }
 0x2ec   :  { %v941_v23 = vmul.f32 %v1775_v32, %v939_v25  ;;  %1778 = vtanh.f32 %v915_v29  ;;  %vm946_vm7 = vweird.f32 %v1775_v32  ;;  %vm928_vm10 = vmor %vm926_vm8, %vm927_vm6  ;;  %vm965_vm15 = vweird.f32 %v959_v36 }
 0x2ed   :  { %v923_v22 = vsub.f32 1.0, %v922_v31  ;;  %vm947_vm11 = vmor %vm945_vm9, %vm946_vm7  ;;  %v952_v31 = vor.u32 1.1754944e-38, %v951_v19  ;;  %v972_v39 = vor.u32 1.1754944e-38, %v971_v30  ;;  %v3280_v30 = vld [vmem:[#allocation19_spill] sm:$0xff] }
 0x2ee   :  { %v942_v40 = vsub.f32 1.0, %v941_v23 }
 0x2ef   :  { %v924_v18 = vmul.f32 %v1773_v41, %v923_v22 }
 0x2f0   :  { %v943_v28 = vmul.f32 %v1775_v32, %v942_v40 }
 0x2f1   :  { %v1777_v21 = vpop.eup %1776  ;;  %v925_v35 = vadd.f32 %v1773_v41, %v924_v18 }
 0x2f2   :  { %v944_v38 = vadd.f32 %v1775_v32, %v943_v28  ;;  %v961_v17 = vmul.f32 %v1777_v21, %v959_v36  ;;  %v1779_v29 = vpop.eup %1778  ;;  %vm966_vm14 = vweird.f32 %v1777_v21  ;;  %v3269_v28 = vld [vmem:[#allocation18_spill] sm:$0xff] }
 0x2f3   :  { %v929_v23 = vsel %vm928_vm10, %v1773_v41, %v925_v35  ;;  %v969_v41 = vand.u32 2147483647, %v959_v36  ;;  %vm967_vm0 = vmor %vm965_vm15, %vm966_vm14  ;;  %v3268_v36 = vld [vmem:[#allocation10_spill] sm:$0xff]  ;;  %v3270_v35 = vld [vmem:[#allocation24_spill] sm:$0xff] }
 0x2f4   :  { %v934_v16 = vsel %vm931_vm12, %v933_v34, %v929_v23  ;;  %v948_v22 = vsel %vm947_vm11, %v1775_v32, %v944_v38  ;;  %v962_v15 = vsub.f32 1.0, %v961_v17  ;;  %v3271_v34 = vld [vmem:[#allocation16_spill] sm:$0xff]  ;;  %v3272_v38 = vld [vmem:[#allocation14_spill] sm:$0xff]  ;;  %v3274_v23 = vld [vmem:[#allocation21_spill] sm:$0xff] }
 0x2f5   :  { %v953_v40 = vsel %vm950_vm13, %v952_v31, %v948_v22  ;;  %v976_v14 = vmul.f32 %v1779_v29, %v934_v16  ;;  %vm970_vm1 = vcmp.eq.f32.partialorder %v969_v41, 8.507059e+37  ;;  %v3266_v16 = vld [vmem:[#allocation11_spill] sm:$0xff]  ;;  %v3275_v29 = vld [vmem:[#allocation22_spill] sm:$0xff]  ;;  %v3276_v22 = vld [vmem:[#allocation20_spill] sm:$0xff] }
 0x2f6   :  { %v975_v24 = vmul.f32 %v953_v40, %v2719_v26  ;;  %v963_v18 = vmul.f32 %v1777_v21, %v962_v15  ;;  %v3262_v26 = vld [vmem:[#allocation8_spill] sm:$0xff]  ;;  %v3273_v31 = vld [vmem:[#allocation15_spill] sm:$0xff]  ;;  %v3277_v40 = vld [vmem:[#allocation17_spill] sm:$0xff] }
 0x2f7   :  { %v3265_v15 = vld [vmem:[#allocation12_spill] sm:$0xff] }
 0x2f8   :  { %v2811_v37 = vadd.f32 %v976_v14, %v975_v24  ;;  %v964_v25 = vadd.f32 %v1777_v21, %v963_v18  ;;  %v3263_v24 = vld [vmem:[#allocation9_spill] sm:$0xff]  ;;  %v3264_v14 = vld [vmem:[#allocation7_spill] sm:$0xff]  ;;  %v3281_v41 = vld [vmem:[#allocation28_spill] sm:$0xff] }
 0x2f9   :  { %v3278_v18 = vld [vmem:[#allocation23_spill] sm:$0xff] }
 0x2fa   :  { %1780 = vtanh.f32 %v2811_v37  ;;  %v968_v19 = vsel %vm967_vm0, %v1777_v21, %v964_v25  ;;  %v3267_v21 = vld [vmem:[#allocation13_spill] sm:$0xff] }
 0x2fb   :  { %v973_v17 = vsel %vm970_vm1, %v972_v39, %v968_v19  ;;  %v3279_v25 = vld [vmem:[#allocation29_spill] sm:$0xff]  ;;  %v3283_v39 = vld [vmem:[#allocation27_spill] sm:$0xff] }
 0x2fc   :  { %v3282_v19 = vld [vmem:[#allocation25_spill] sm:$0xff] }
 0x300   :  { %v1781_v27 = vpop.eup %1780 }
 0x301   :  { %v979_v32 = vmul.f32 %v1781_v27, %v973_v17  ;;  %v3284_v27 = vld [vmem:[#allocation26_spill] sm:$0xff]  ;;  %v3285_v17 = vld [vmem:[#allocation31_spill] sm:$0xff] }
 0x303   :  { %1003 = vmatmul.f32.vlgmr.msrb.gmra.mxu0 %v979_v32  ;;  %1023 = vmatmul.f32.vlgmr.msra.gmra.mxu1 %v979_v32 }
 0x304   :  { %1043 = vmatmul.f32.vlgmr.msra.gmra.mxu2 %v979_v32  ;;  %1063 = vmatmul.f32.vlgmr.msra.gmra.mxu3 %v979_v32  ;;  %v3286_v32 = vld [vmem:[#allocation30_spill] sm:$0xff] }
 0x305   :  { %1295 = vmatpush.msrb.mxu0 %v2542_v55  ;;  %1315 = vmatpush.msra.mxu1 %v2545_v42 }
 0x306   :  { %1335 = vmatpush.msra.mxu2 %v2548_v43  ;;  %1355 = vmatpush.msra.mxu3 %v2551_v44 }
 0x307   :  { %1296 = vmatpush.msrb.mxu0 %v2554_v45  ;;  %1316 = vmatpush.msra.mxu1 %v2557_v47 }
 0x308   :  { %1336 = vmatpush.msra.mxu2 %v2560_v48  ;;  %1356 = vmatpush.msra.mxu3 %v2563_v49 }
 0x309   :  { %1297 = vmatpush.msrb.mxu0 %v2566_v50  ;;  %1317 = vmatpush.msra.mxu1 %v2569_v51 }
 0x30a   :  { %1337 = vmatpush.msra.mxu2 %v2572_v53  ;;  %1357 = vmatpush.msra.mxu3 %v2575_v54 }
 0x30b   :  { %1298 = vmatpush.msrb.mxu0 %v2578_v10  ;;  %1318 = vmatpush.msra.mxu1 %v2581_v57 }
 0x30c   :  { %1338 = vmatpush.msra.mxu2 %v2584_v3  ;;  %1358 = vmatpush.msra.mxu3 %v2587_v8 }
 0x30d   :  { %1299 = vmatpush.msrb.mxu0 %v2590_v60  ;;  %1319 = vmatpush.msra.mxu1 %v2593_v2 }
 0x30e   :  { %1339 = vmatpush.msra.mxu2 %v2596_v0  ;;  %1359 = vmatpush.msra.mxu3 %v2599_v46 }
 0x30f   :  { %1300 = vmatpush.msrb.mxu0 %v2602_v20  ;;  %1320 = vmatpush.msra.mxu1 %v2605_v5 }
 0x310   :  { %1340 = vmatpush.msra.mxu2 %v2608_v56  ;;  %1360 = vmatpush.msra.mxu3 %v2611_v61 }
 0x311   :  { %1301 = vmatpush.msrb.mxu0 %v2614_v62  ;;  %1321 = vmatpush.msra.mxu1 %v2617_v4 }
 0x312   :  { %1341 = vmatpush.msra.mxu2 %v2620_v7  ;;  %1361 = vmatpush.msra.mxu3 %v2623_v63 }
 0x313   :  { %1302 = vmatpush.msrb.mxu0 %v2626_v9  ;;  %1322 = vmatpush.msra.mxu1 %v2629_v6 }
 0x314   :  { %1342 = vmatpush.msra.mxu2 %v2632_v52  ;;  %1362 = vmatpush.msra.mxu3 %v2635_v1 }
 0x315   :  { %1303 = vmatpush.msrb.mxu0 %v2638_v59  ;;  %1323 = vmatpush.msra.mxu1 %v2641_v33 }
 0x316   :  { %1343 = vmatpush.msra.mxu2 %v2644_v58  ;;  %1363 = vmatpush.msra.mxu3 %v2647_v11 }
 0x317   :  { %1304 = vmatpush.msrb.mxu0 %v2650_v12  ;;  %1324 = vmatpush.msra.mxu1 %v2653_v13 }
 0x318   :  { %1344 = vmatpush.msra.mxu2 %v3262_v26  ;;  %1364 = vmatpush.msra.mxu3 %v3263_v24 }
 0x319   :  { %1305 = vmatpush.msrb.mxu0 %v3264_v14  ;;  %1325 = vmatpush.msra.mxu1 %v3265_v15 }
 0x31a   :  { %1345 = vmatpush.msra.mxu2 %v3266_v16  ;;  %1365 = vmatpush.msra.mxu3 %v3267_v21 }
 0x31b   :  { %1306 = vmatpush.msrb.mxu0 %v3268_v36  ;;  %1326 = vmatpush.msra.mxu1 %v3269_v28 }
 0x31c   :  { %1346 = vmatpush.msra.mxu2 %v3270_v35  ;;  %1366 = vmatpush.msra.mxu3 %v3271_v34 }
 0x31d   :  { %1307 = vmatpush.msrb.mxu0 %v3272_v38  ;;  %1327 = vmatpush.msra.mxu1 %v3273_v31 }
 0x31e   :  { %1347 = vmatpush.msra.mxu2 %v3274_v23  ;;  %1367 = vmatpush.msra.mxu3 %v3275_v29  ;;  %v3288_v29 = vld [vmem:[#allocation45_spill] sm:$0xff]  ;;  %v3289_v23 = vld [vmem:[#allocation48_spill] sm:$0xff] }
 0x31f   :  { %1308 = vmatpush.msrb.mxu0 %v3276_v22  ;;  %1328 = vmatpush.msra.mxu1 %v3277_v40  ;;  %v3287_v22 = vld [vmem:[#allocation35_spill] sm:$0xff] }
 0x320   :  { %1348 = vmatpush.msra.mxu2 %v3278_v18  ;;  %1368 = vmatpush.msra.mxu3 %v3279_v25 }
 0x321   :  { %1309 = vmatpush.msrb.mxu0 %v3280_v30  ;;  %1329 = vmatpush.msra.mxu1 %v3281_v41 }
 0x322   :  { %1349 = vmatpush.msra.mxu2 %v3282_v19  ;;  %1369 = vmatpush.msra.mxu3 %v3283_v39  ;;  %v3290_v39 = vld [vmem:[#allocation50_spill] sm:$0xff] }
 0x323   :  { %1310 = vmatpush.msrb.mxu0 %v3284_v27  ;;  %1330 = vmatpush.msra.mxu1 %v3285_v17 }
 0x324   :  { %1350 = vmatpush.msra.mxu2 %v3286_v32  ;;  %1370 = vmatpush.msra.mxu3 %v3287_v22 }
 0x380   :  { %v1004_v40 = vpop.f32.mrf.mxu0  ;;  %v1024_v18 = vpop.f32.mrf.mxu1 }
 0x381   :  { %v1067_v25 = vadd.f32 %v1004_v40, %v3288_v29  ;;  %v1068_v30 = vadd.f32 %v1024_v18, %v3289_v23  ;;  %v3291_v23 = vld [vmem:[#allocation49_spill] sm:$0xff] }
 0x383   :  { %v1698_v31 = vmul.f32 -1.442695, %v1067_v25  ;;  %v1699_v41 = vmul.f32 -1.442695, %v1068_v30 }
 0x385   :  { %1782 = vpow2.f32 %v1698_v31 }
 0x386   :  { %1784 = vpow2.f32 %v1699_v41 }
 0x387   :  { %v1064_v19 = vpop.f32.mrf.mxu3  ;;  %v1044_v22 = vpop.f32.mrf.mxu2 }
 0x388   :  { %v1070_v38 = vadd.f32 %v1064_v19, %v3290_v39  ;;  %v1069_v18 = vadd.f32 %v1044_v22, %v3291_v23 }
 0x38a   :  { %v1700_v27 = vmul.f32 -1.442695, %v1070_v38 }
 0x38b   :  { %v1783_v34 = vpop.eup %1782 }
 0x38c   :  { %v1785_v17 = vpop.eup %1784  ;;  %v1074_v35 = vadd.f32 1.0, %v1783_v34  ;;  %1786 = vpow2.f32 %v1700_v27 }
 0x38d   :  { %v1093_v32 = vadd.f32 1.0, %v1785_v17 }
 0x38e   :  { %1788 = vrcp.f32 %v1074_v35  ;;  %v1086_v38 = vand.u32 2147483648, %v1074_v35  ;;  %v1084_v27 = vand.u32 2147483647, %v1074_v35  ;;  %vm1080_vm4 = vweird.f32 %v1074_v35 }
 0x38f   :  { %1790 = vrcp.f32 %v1093_v32  ;;  %v1105_v39 = vand.u32 2147483648, %v1093_v32  ;;  %v1103_v36 = vand.u32 2147483647, %v1093_v32  ;;  %vm1099_vm5 = vweird.f32 %v1093_v32 }
 0x390   :  { %v1087_v22 = vor.u32 1.1754944e-38, %v1086_v38  ;;  %vm1085_vm8 = vcmp.eq.f32.partialorder %v1084_v27, 8.507059e+37 }
 0x391   :  { %vm1104_vm9 = vcmp.eq.f32.partialorder %v1103_v36, 8.507059e+37 }
 0x392   :  { %v1787_v28 = vpop.eup %1786 }
 0x393   :  { %v1113_v29 = vadd.f32 1.0, %v1787_v28 }
 0x394   :  { %v1789_v40 = vpop.eup %1788 }
 0x395   :  { %v1791_v25 = vpop.eup %1790  ;;  %v1076_v31 = vmul.f32 %v1789_v40, %v1074_v35  ;;  %1792 = vrcp.f32 %v1113_v29  ;;  %vm1081_vm2 = vweird.f32 %v1789_v40  ;;  %v1125_v38 = vand.u32 2147483648, %v1113_v29 }
 0x396   :  { %v1095_v30 = vmul.f32 %v1791_v25, %v1093_v32  ;;  %1794 = vtanh.f32 %v1069_v18  ;;  %vm1100_vm3 = vweird.f32 %v1791_v25  ;;  %vm1082_vm6 = vmor %vm1080_vm4, %vm1081_vm2  ;;  %vm1119_vm11 = vweird.f32 %v1113_v29 }
 0x397   :  { %v1077_v41 = vsub.f32 1.0, %v1076_v31  ;;  %vm1101_vm7 = vmor %vm1099_vm5, %vm1100_vm3  ;;  %v1106_v31 = vor.u32 1.1754944e-38, %v1105_v39  ;;  %v1126_v27 = vor.u32 1.1754944e-38, %v1125_v38 }
 0x398   :  { %v1096_v19 = vsub.f32 1.0, %v1095_v30 }
 0x399   :  { %v1078_v34 = vmul.f32 %v1789_v40, %v1077_v41 }
 0x39a   :  { %v1097_v17 = vmul.f32 %v1791_v25, %v1096_v19 }
 0x39b   :  { %v1793_v21 = vpop.eup %1792  ;;  %v1079_v28 = vadd.f32 %v1789_v40, %v1078_v34 }
 0x39c   :  { %v1098_v23 = vadd.f32 %v1791_v25, %v1097_v17  ;;  %v1115_v16 = vmul.f32 %v1793_v21, %v1113_v29  ;;  %v1795_v18 = vpop.eup %1794  ;;  %vm1120_vm10 = vweird.f32 %v1793_v21 }
 0x39d   :  { %v1083_v30 = vsel %vm1082_vm6, %v1789_v40, %v1079_v28  ;;  %v1123_v40 = vand.u32 2147483647, %v1113_v29  ;;  %vm1121_vm12 = vmor %vm1119_vm11, %vm1120_vm10  ;;  %v3321_v28 = vld [vmem:[#allocation52_spill] sm:$0xff] }
 0x39e   :  { %v1088_v15 = vsel %vm1085_vm8, %v1087_v22, %v1083_v30  ;;  %v1102_v41 = vsel %vm1101_vm7, %v1791_v25, %v1098_v23  ;;  %v1116_v14 = vsub.f32 1.0, %v1115_v16 }
 0x39f   :  { %v1107_v19 = vsel %vm1104_vm9, %v1106_v31, %v1102_v41  ;;  %v1130_v24 = vmul.f32 %v1795_v18, %v1088_v15  ;;  %vm1124_vm13 = vcmp.eq.f32.partialorder %v1123_v40, 8.507059e+37 }
 0x3a0   :  { %v1129_v26 = vmul.f32 %v1107_v19, %v2811_v37  ;;  %v1117_v34 = vmul.f32 %v1793_v21, %v1116_v14 }
 0x3a2   :  { %v2883_v35 = vadd.f32 %v1130_v24, %v1129_v26  ;;  %v1118_v32 = vadd.f32 %v1793_v21, %v1117_v34 }
 0x3a4   :  { %1796 = vtanh.f32 %v2883_v35  ;;  %v1122_v39 = vsel %vm1121_vm12, %v1793_v21, %v1118_v32 }
 0x3a5   :  { %v1127_v16 = vsel %vm1124_vm13, %v1126_v27, %v1122_v39 }
 0x3aa   :  { %v1797_v36 = vpop.eup %1796 }
 0x3ab   :  { %v1133_v25 = vmul.f32 %v1797_v36, %v1127_v16 }
 0x3ad   :  { %1157 = vmatmul.f32.vlgmr.msra.gmra.mxu0 %v1133_v25  ;;  %1177 = vmatmul.f32.vlgmr.msrb.gmra.mxu1 %v1133_v25 }
 0x3ae   :  { %1197 = vmatmul.f32.vlgmr.msrb.gmra.mxu2 %v1133_v25  ;;  %1217 = vmatmul.f32.vlgmr.msrb.gmra.mxu3 %v1133_v25 }
 0x3af   :  { %1449 = vmatpush.msra.mxu0 %v2542_v55  ;;  %1469 = vmatpush.msrb.mxu1 %v2545_v42  ;;  %v3292_v55 = vld [vmem:[#allocation8_spill] sm:$0xff]  ;;  %v3293_v42 = vld [vmem:[#allocation9_spill] sm:$0xff] }
 0x3b0   :  { %1489 = vmatpush.msrb.mxu2 %v2548_v43  ;;  %1509 = vmatpush.msrb.mxu3 %v2551_v44  ;;  %v3294_v43 = vld [vmem:[#allocation7_spill] sm:$0xff]  ;;  %v3295_v44 = vld [vmem:[#allocation12_spill] sm:$0xff] }
 0x3b1   :  { %1450 = vmatpush.msra.mxu0 %v2554_v45  ;;  %1470 = vmatpush.msrb.mxu1 %v2557_v47  ;;  %v3296_v45 = vld [vmem:[#allocation11_spill] sm:$0xff]  ;;  %v3297_v47 = vld [vmem:[#allocation13_spill] sm:$0xff] }
 0x3b2   :  { %1490 = vmatpush.msrb.mxu2 %v2560_v48  ;;  %1510 = vmatpush.msrb.mxu3 %v2563_v49  ;;  %v3298_v48 = vld [vmem:[#allocation10_spill] sm:$0xff] }
 0x3b3   :  { %1451 = vmatpush.msra.mxu0 %v2566_v50  ;;  %1471 = vmatpush.msrb.mxu1 %v2569_v51  ;;  %v3299_v49 = vld [vmem:[#allocation18_spill] sm:$0xff]  ;;  %v3300_v50 = vld [vmem:[#allocation24_spill] sm:$0xff] }
 0x3b4   :  { %1491 = vmatpush.msrb.mxu2 %v2572_v53  ;;  %1511 = vmatpush.msrb.mxu3 %v2575_v54  ;;  %v3301_v51 = vld [vmem:[#allocation16_spill] sm:$0xff]  ;;  %v3302_v53 = vld [vmem:[#allocation14_spill] sm:$0xff]  ;;  %v3303_v54 = vld [vmem:[#allocation15_spill] sm:$0xff] }
 0x3b5   :  { %1452 = vmatpush.msra.mxu0 %v2578_v10  ;;  %1472 = vmatpush.msrb.mxu1 %v2581_v57  ;;  %v3304_v10 = vld [vmem:[#allocation21_spill] sm:$0xff]  ;;  %v3305_v57 = vld [vmem:[#allocation22_spill] sm:$0xff] }
 0x3b6   :  { %1492 = vmatpush.msrb.mxu2 %v2584_v3  ;;  %1512 = vmatpush.msrb.mxu3 %v2587_v8  ;;  %v3306_v3 = vld [vmem:[#allocation20_spill] sm:$0xff]  ;;  %v3307_v8 = vld [vmem:[#allocation17_spill] sm:$0xff] }
 0x3b7   :  { %1453 = vmatpush.msra.mxu0 %v2590_v60  ;;  %1473 = vmatpush.msrb.mxu1 %v2593_v2  ;;  %v3308_v60 = vld [vmem:[#allocation23_spill] sm:$0xff]  ;;  %v3309_v2 = vld [vmem:[#allocation29_spill] sm:$0xff] }
 0x3b8   :  { %1493 = vmatpush.msrb.mxu2 %v2596_v0  ;;  %1513 = vmatpush.msrb.mxu3 %v2599_v46  ;;  %v3310_v0 = vld [vmem:[#allocation19_spill] sm:$0xff]  ;;  %v3311_v46 = vld [vmem:[#allocation28_spill] sm:$0xff] }
 0x3b9   :  { %1454 = vmatpush.msra.mxu0 %v2602_v20  ;;  %1474 = vmatpush.msrb.mxu1 %v2605_v5  ;;  %v3312_v20 = vld [vmem:[#allocation25_spill] sm:$0xff]  ;;  %v3313_v5 = vld [vmem:[#allocation27_spill] sm:$0xff] }
 0x3ba   :  { %1494 = vmatpush.msrb.mxu2 %v2608_v56  ;;  %1514 = vmatpush.msrb.mxu3 %v2611_v61  ;;  %v3314_v56 = vld [vmem:[#allocation26_spill] sm:$0xff]  ;;  %v3315_v61 = vld [vmem:[#allocation31_spill] sm:$0xff] }
 0x3bb   :  { %1455 = vmatpush.msra.mxu0 %v2614_v62  ;;  %1475 = vmatpush.msrb.mxu1 %v2617_v4  ;;  %v3316_v62 = vld [vmem:[#allocation30_spill] sm:$0xff]  ;;  %v3317_v4 = vld [vmem:[#allocation35_spill] sm:$0xff] }
 0x3bc   :  { %1495 = vmatpush.msrb.mxu2 %v2620_v7  ;;  %1515 = vmatpush.msrb.mxu3 %v2623_v63 }
 0x3bd   :  { %1456 = vmatpush.msra.mxu0 %v2626_v9  ;;  %1476 = vmatpush.msrb.mxu1 %v2629_v6  ;;  %v3318_v9 = vld [vmem:[#allocation32_spill] sm:$0xff] }
 0x3be   :  { %1496 = vmatpush.msrb.mxu2 %v2632_v52  ;;  %1516 = vmatpush.msrb.mxu3 %v2635_v1  ;;  %v3319_v52 = vld [vmem:[#allocation51_spill] sm:$0xff] }
 0x3bf   :  { %1457 = vmatpush.msra.mxu0 %v2638_v59  ;;  %1477 = vmatpush.msrb.mxu1 %v2641_v33 }
 0x3c0   :  { %1497 = vmatpush.msrb.mxu2 %v2644_v58  ;;  %1517 = vmatpush.msrb.mxu3 %v2647_v11  ;;  %v3320_v11 = vld [vmem:[#allocation53_spill] sm:$0xff] }
 0x3c1   :  { %1458 = vmatpush.msra.mxu0 %v2650_v12  ;;  %1478 = vmatpush.msrb.mxu1 %v2653_v13 }
 0x3c2   :  { %1498 = vmatpush.msrb.mxu2 %v3292_v55  ;;  %1518 = vmatpush.msrb.mxu3 %v3293_v42 }
 0x3c3   :  { %1459 = vmatpush.msra.mxu0 %v3294_v43  ;;  %1479 = vmatpush.msrb.mxu1 %v3295_v44 }
 0x3c4   :  { %1499 = vmatpush.msrb.mxu2 %v3296_v45  ;;  %1519 = vmatpush.msrb.mxu3 %v3297_v47 }
 0x3c5   :  { %1460 = vmatpush.msra.mxu0 %v3298_v48  ;;  %1480 = vmatpush.msrb.mxu1 %v3299_v49 }
 0x3c6   :  { %1500 = vmatpush.msrb.mxu2 %v3300_v50  ;;  %1520 = vmatpush.msrb.mxu3 %v3301_v51 }
 0x3c7   :  { %1461 = vmatpush.msra.mxu0 %v3302_v53  ;;  %1481 = vmatpush.msrb.mxu1 %v3303_v54 }
 0x3c8   :  { %1501 = vmatpush.msrb.mxu2 %v3304_v10  ;;  %1521 = vmatpush.msrb.mxu3 %v3305_v57 }
 0x3c9   :  { %1462 = vmatpush.msra.mxu0 %v3306_v3  ;;  %1482 = vmatpush.msrb.mxu1 %v3307_v8 }
 0x3ca   :  { %1502 = vmatpush.msrb.mxu2 %v3308_v60  ;;  %1522 = vmatpush.msrb.mxu3 %v3309_v2 }
 0x3cb   :  { %1463 = vmatpush.msra.mxu0 %v3310_v0  ;;  %1483 = vmatpush.msrb.mxu1 %v3311_v46 }
 0x3cc   :  { %1503 = vmatpush.msrb.mxu2 %v3312_v20  ;;  %1523 = vmatpush.msrb.mxu3 %v3313_v5  ;;  %v3322_v5 = vld [vmem:[#allocation33_spill] sm:$0xff] }
 0x3cd   :  { %1464 = vmatpush.msra.mxu0 %v3314_v56  ;;  %1484 = vmatpush.msrb.mxu1 %v3315_v61  ;;  %v3323_v61 = vld [vmem:[#allocation54_spill] sm:$0xff] }
 0x3ce   :  { %1504 = vmatpush.msrb.mxu2 %v3316_v62  ;;  %1524 = vmatpush.msrb.mxu3 %v3317_v4 }
 0x42a   :  { %v1158_v7 = vpop.f32.mrf.mxu0  ;;  %v1178_v63 = vpop.f32.mrf.mxu1 }
 0x42b   :  { %v1221_v6 = vadd.f32 %v1158_v7, %v3318_v9  ;;  %v1222_v1 = vadd.f32 %v1178_v63, %v3319_v52  ;;  %v3324_v9 = vld [vmem:[#allocation56_spill] sm:$0xff] }
 0x42d   :  { %v1701_v59 = vmul.f32 -1.442695, %v1221_v6  ;;  %v1702_v33 = vmul.f32 -1.442695, %v1222_v1 }
 0x42f   :  { %1798 = vpow2.f32 %v1701_v59 }
 0x430   :  { %1800 = vpow2.f32 %v1702_v33 }
 0x431   :  { %v1218_v58 = vpop.f32.mrf.mxu3  ;;  %v1198_v15 = vpop.f32.mrf.mxu2 }
 0x432   :  { %v1224_v12 = vadd.f32 %v1218_v58, %v3320_v11  ;;  %v1223_v22 = vadd.f32 %v1198_v15, %v3321_v28 }
 0x434   :  { %v1703_v13 = vmul.f32 -1.442695, %v1224_v12 }
 0x435   :  { %v1799_v37 = vpop.eup %1798 }
 0x436   :  { %v1801_v26 = vpop.eup %1800  ;;  %v1228_v24 = vadd.f32 1.0, %v1799_v37  ;;  %1802 = vpow2.f32 %v1703_v13 }
 0x437   :  { %v1247_v14 = vadd.f32 1.0, %v1801_v26  ;;  %v3325_v26 = vld [vmem:[#allocation55_spill] sm:$0xff] }
 0x438   :  { %1804 = vrcp.f32 %v1228_v24  ;;  %v1240_v19 = vand.u32 2147483648, %v1228_v24  ;;  %v1238_v38 = vand.u32 2147483647, %v1228_v24  ;;  %vm1234_vm0 = vweird.f32 %v1228_v24 }
 0x439   :  { %1806 = vrcp.f32 %v1247_v14  ;;  %v1259_v34 = vand.u32 2147483648, %v1247_v14  ;;  %v1257_v39 = vand.u32 2147483647, %v1247_v14  ;;  %vm1253_vm1 = vweird.f32 %v1247_v14 }
 0x43a   :  { %v1241_v16 = vor.u32 1.1754944e-38, %v1240_v19  ;;  %vm1239_vm4 = vcmp.eq.f32.partialorder %v1238_v38, 8.507059e+37 }
 0x43b   :  { %v1260_v42 = vor.u32 1.1754944e-38, %v1259_v34  ;;  %vm1258_vm5 = vcmp.eq.f32.partialorder %v1257_v39, 8.507059e+37 }
 0x43c   :  { %v1803_v21 = vpop.eup %1802 }
 0x43d   :  { %v1267_v29 = vadd.f32 1.0, %v1803_v21 }
 0x43e   :  { %v1805_v17 = vpop.eup %1804 }
 0x43f   :  { %v1807_v23 = vpop.eup %1806  ;;  %v1230_v31 = vmul.f32 %v1805_v17, %v1228_v24  ;;  %1808 = vrcp.f32 %v1267_v29  ;;  %vm1235_vm14 = vweird.f32 %v1805_v17  ;;  %v1279_v57 = vand.u32 2147483648, %v1267_v29 }
 0x440   :  { %v1249_v30 = vmul.f32 %v1807_v23, %v1247_v14  ;;  %1810 = vtanh.f32 %v1223_v22  ;;  %vm1254_vm15 = vweird.f32 %v1807_v23  ;;  %vm1236_vm2 = vmor %vm1234_vm0, %vm1235_vm14  ;;  %vm1273_vm7 = vweird.f32 %v1267_v29 }
 0x441   :  { %v1231_v18 = vsub.f32 1.0, %v1230_v31  ;;  %vm1255_vm3 = vmor %vm1253_vm1, %vm1254_vm15  ;;  %v1277_v3 = vand.u32 2147483647, %v1267_v29  ;;  %v1280_v60 = vor.u32 1.1754944e-38, %v1279_v57 }
 0x442   :  { %v1250_v41 = vsub.f32 1.0, %v1249_v30 }
 0x443   :  { %v1232_v32 = vmul.f32 %v1805_v17, %v1231_v18  ;;  %vm1278_vm9 = vcmp.eq.f32.partialorder %v1277_v3, 8.507059e+37  ;;  %v1610_v3 = vld [vmem:[%s3026_s4 + $0x70] sm:$0xff] }
 0x444   :  { %v1251_v40 = vmul.f32 %v1807_v23, %v1250_v41 }
 0x445   :  { %v1809_v27 = vpop.eup %1808  ;;  %v1233_v36 = vadd.f32 %v1805_v17, %v1232_v32 }
 0x446   :  { %v1252_v25 = vadd.f32 %v1807_v23, %v1251_v40  ;;  %v1269_v55 = vmul.f32 %v1809_v27, %v1267_v29  ;;  %v1811_v44 = vpop.eup %1810  ;;  %vm1274_vm6 = vweird.f32 %v1809_v27 }
 0x447   :  { %v1237_v43 = vsel %vm1236_vm2, %v1805_v17, %v1233_v36  ;;  %vm1275_vm8 = vmor %vm1273_vm7, %vm1274_vm6 }
 0x448   :  { %v1242_v45 = vsel %vm1239_vm4, %v1241_v16, %v1237_v43  ;;  %v1256_v47 = vsel %vm1255_vm3, %v1807_v23, %v1252_v25  ;;  %v1270_v48 = vsub.f32 1.0, %v1269_v55 }
 0x449   :  { %v1261_v49 = vsel %vm1258_vm5, %v1260_v42, %v1256_v47  ;;  %v1284_v50 = vmul.f32 %v1811_v44, %v1242_v45 }
 0x44a   :  { %v1283_v51 = vmul.f32 %v1261_v49, %v2883_v35  ;;  %v1271_v53 = vmul.f32 %v1809_v27, %v1270_v48 }
 0x44c   :  { %v2955_v54 = vadd.f32 %v1284_v50, %v1283_v51  ;;  %v1272_v10 = vadd.f32 %v1809_v27, %v1271_v53 }
 0x44e   :  { %1812 = vtanh.f32 %v2955_v54  ;;  %v1276_v8 = vsel %vm1275_vm8, %v1809_v27, %v1272_v10 }
 0x44f   :  { %v1281_v0 = vsel %vm1278_vm9, %v1280_v60, %v1276_v8  ;;  %v1609_v8 = vld [vmem:[%s3026_s4 + $0x68] sm:$0xff]  ;;  %v1608_v60 = vld [vmem:[%s3026_s4 + $0x60] sm:$0xff] }
 0x454   :  { %v1813_v2 = vpop.eup %1812 }
 0x455   :  { %v1287_v46 = vmul.f32 %v1813_v2, %v1281_v0  ;;  %v1607_v2 = vld [vmem:[%s3026_s4 + $0x58] sm:$0xff]  ;;  %v1606_v0 = vld [vmem:[%s3026_s4 + $0x50] sm:$0xff] }
 0x457   :  { %1311 = vmatmul.f32.vlgmr.msrb.gmra.mxu0 %v1287_v46  ;;  %1331 = vmatmul.f32.vlgmr.msra.gmra.mxu1 %v1287_v46 }
 0x458   :  { %1351 = vmatmul.f32.vlgmr.msra.gmra.mxu2 %v1287_v46  ;;  %1371 = vmatmul.f32.vlgmr.msra.gmra.mxu3 %v1287_v46  ;;  %v1605_v46 = vld [vmem:[%s3026_s4 + $0x48] sm:$0xff] }
 0x4d4   :  { %v1312_v35 = vpop.f32.mrf.mxu0  ;;  %v1332_v20 = vpop.f32.mrf.mxu1 }
 0x4d5   :  { %v1375_v56 = vadd.f32 %v1312_v35, %v3322_v5  ;;  %v1376_v62 = vadd.f32 %v1332_v20, %v3323_v61  ;;  %v1604_v35 = vld [vmem:[%s3026_s4 + $0x40] sm:$0xff]  ;;  %v1603_v20 = vld [vmem:[%s3026_s4 + $0x38] sm:$0xff]  ;;  %v1602_v5 = vld [vmem:[%s3026_s4 + $0x30] sm:$0xff] }
 0x4d7   :  { %v1704_v4 = vmul.f32 -1.442695, %v1375_v56  ;;  %v1705_v7 = vmul.f32 -1.442695, %v1376_v62  ;;  %v3326_v62 = vld [vmem:[#allocation34_spill] sm:$0xff] }
 0x4d9   :  { %1814 = vpow2.f32 %v1704_v4 }
 0x4da   :  { %1816 = vpow2.f32 %v1705_v7  ;;  %v3327_v7 = vld [vmem:[#allocation57_spill] sm:$0xff] }
 0x4db   :  { %v1372_v63 = vpop.f32.mrf.mxu3  ;;  %v1352_v11 = vpop.f32.mrf.mxu2 }
 0x4dc   :  { %v1378_v6 = vadd.f32 %v1372_v63, %v3324_v9  ;;  %v1377_v24 = vadd.f32 %v1352_v11, %v3325_v26  ;;  %v1601_v9 = vld [vmem:[%s3026_s4 + $0x28] sm:$0xff] }
 0x4dd   :  { %v1597_v11 = vld [vmem:[%s3026_s4 + $0x8] sm:$0xff] }
 0x4de   :  { %v1706_v52 = vmul.f32 -1.442695, %v1378_v6 }
 0x4df   :  { %v1815_v1 = vpop.eup %1814 }
 0x4e0   :  { %v1817_v59 = vpop.eup %1816  ;;  %v1382_v33 = vadd.f32 1.0, %v1815_v1  ;;  %1818 = vpow2.f32 %v1706_v52  ;;  %v1600_v1 = vld [vmem:[%s3026_s4 + $0x20] sm:$0xff] }
 0x4e1   :  { %v1401_v58 = vadd.f32 1.0, %v1817_v59  ;;  %v1599_v59 = vld [vmem:[%s3026_s4 + $0x18] sm:$0xff] }
 0x4e2   :  { %1820 = vrcp.f32 %v1382_v33  ;;  %v1394_v28 = vand.u32 2147483648, %v1382_v33  ;;  %v1392_v31 = vand.u32 2147483647, %v1382_v33  ;;  %vm1388_vm12 = vweird.f32 %v1382_v33 }
 0x4e3   :  { %1822 = vrcp.f32 %v1401_v58  ;;  %v1413_v22 = vand.u32 2147483648, %v1401_v58  ;;  %v1411_v18 = vand.u32 2147483647, %v1401_v58  ;;  %vm1407_vm13 = vweird.f32 %v1401_v58 }
 0x4e4   :  { %v1395_v34 = vor.u32 1.1754944e-38, %v1394_v28  ;;  %vm1393_vm0 = vcmp.eq.f32.partialorder %v1392_v31, 8.507059e+37 }
 0x4e5   :  { %v1414_v40 = vor.u32 1.1754944e-38, %v1413_v22  ;;  %vm1412_vm1 = vcmp.eq.f32.partialorder %v1411_v18, 8.507059e+37 }
 0x4e6   :  { %v1819_v12 = vpop.eup %1818 }
 0x4e7   :  { %v1421_v13 = vadd.f32 1.0, %v1819_v12  ;;  %v3328_v12 = vld [vmem:[#allocation59_spill] sm:$0xff] }
 0x4e8   :  { %v1821_v37 = vpop.eup %1820 }
 0x4e9   :  { %v1823_v14 = vpop.eup %1822  ;;  %v1384_v15 = vmul.f32 %v1821_v37, %v1382_v33  ;;  %1824 = vrcp.f32 %v1421_v13  ;;  %vm1389_vm10 = vweird.f32 %v1821_v37  ;;  %v1433_v48 = vand.u32 2147483648, %v1421_v13  ;;  %v1598_v33 = vld [vmem:[%s3026_s4 + $0x10] sm:$0xff] }
 0x4ea   :  { %v1403_v21 = vmul.f32 %v1823_v14, %v1401_v58  ;;  %1826 = vtanh.f32 %v1377_v24  ;;  %vm1408_vm11 = vweird.f32 %v1823_v14  ;;  %vm1390_vm14 = vmor %vm1388_vm12, %vm1389_vm10  ;;  %vm1427_vm3 = vweird.f32 %v1421_v13 }
 0x4eb   :  { %v1385_v29 = vsub.f32 1.0, %v1384_v15  ;;  %vm1409_vm15 = vmor %vm1407_vm13, %vm1408_vm11  ;;  %v1431_v49 = vand.u32 2147483647, %v1421_v13  ;;  %v1434_v51 = vor.u32 1.1754944e-38, %v1433_v48 }
 0x4ec   :  { %v1404_v17 = vsub.f32 1.0, %v1403_v21 }
 0x4ed   :  { %v1386_v23 = vmul.f32 %v1821_v37, %v1385_v29  ;;  %vm1432_vm5 = vcmp.eq.f32.partialorder %v1431_v49, 8.507059e+37 }
 0x4ee   :  { %v1405_v30 = vmul.f32 %v1823_v14, %v1404_v17 }
 0x4ef   :  { %v1825_v41 = vpop.eup %1824  ;;  %v1387_v19 = vadd.f32 %v1821_v37, %v1386_v23  ;;  %v3329_v23 = vld [vmem:[#allocation58_spill] sm:$0xff] }
 0x4f0   :  { %v1406_v32 = vadd.f32 %v1823_v14, %v1405_v30  ;;  %v1423_v38 = vmul.f32 %v1825_v41, %v1421_v13  ;;  %v1827_v27 = vpop.eup %1826  ;;  %vm1428_vm2 = vweird.f32 %v1825_v41 }
 0x4f1   :  { %v1391_v39 = vsel %vm1390_vm14, %v1821_v37, %v1387_v19  ;;  %vm1429_vm4 = vmor %vm1427_vm3, %vm1428_vm2  ;;  %v1596_v37 = vld [vmem:[%s3026_s4] sm:$0xff]  ;;  %vm1636_vm2 = vcmask 7168  }
 0x4f2   :  { %v1396_v36 = vsel %vm1393_vm0, %v1395_v34, %v1391_v39  ;;  %v1410_v16 = vsel %vm1409_vm15, %v1823_v14, %v1406_v32  ;;  %v1424_v25 = vsub.f32 1.0, %v1423_v38 }
 0x4f3   :  { %v1415_v55 = vsel %vm1412_vm1, %v1414_v40, %v1410_v16  ;;  %v1438_v42 = vmul.f32 %v1827_v27, %v1396_v36 }
 0x4f4   :  { %v1437_v43 = vmul.f32 %v1415_v55, %v2955_v54  ;;  %v1425_v44 = vmul.f32 %v1825_v41, %v1424_v25  ;;  %v1611_v54 = vld [vmem:[%s3026_s4 + $0x78] sm:$0xff] }
 0x4f5   :  { %1616 = vmatpush.msrb.mxu0 %v1611_v54 }
 0x4f6   :  { %v2963_v45 = vadd.f32 %v1438_v42, %v1437_v43  ;;  %v1426_v47 = vadd.f32 %v1825_v41, %v1425_v44 }
 0x4f7   :  { %1617 = vmatpush.msrb.mxu0 %v1610_v3 }
 0x4f8   :  { %1828 = vtanh.f32 %v2963_v45  ;;  %v1430_v50 = vsel %vm1429_vm4, %v1825_v41, %v1426_v47 }
 0x4f9   :  { %v1435_v10 = vsel %vm1432_vm5, %v1434_v51, %v1430_v50  ;;  %1618 = vmatpush.msrb.mxu0 %v1609_v8 }
 0x4fb   :  { %1619 = vmatpush.msrb.mxu0 %v1608_v60 }
 0x4fd   :  { %1620 = vmatpush.msrb.mxu0 %v1607_v2 }
 0x4fe   :  { %v1829_v53 = vpop.eup %1828 }
 0x4ff   :  { %v1441_v57 = vmul.f32 %v1829_v53, %v1435_v10  ;;  %1621 = vmatpush.msrb.mxu0 %v1606_v0 }
 0x501   :  { %1465 = vmatmul.f32.vlgmr.msra.gmra.mxu0 %v1441_v57  ;;  %1485 = vmatmul.f32.vlgmr.msrb.gmra.mxu1 %v1441_v57 }
 0x502   :  { %1505 = vmatmul.f32.vlgmr.msrb.gmra.mxu2 %v1441_v57  ;;  %1525 = vmatmul.f32.vlgmr.msrb.gmra.mxu3 %v1441_v57 }
 0x503   :  { %1622 = vmatpush.msrb.mxu0 %v1605_v46 }
 0x505   :  { %1623 = vmatpush.msrb.mxu0 %v1604_v35 }
 0x507   :  { %1624 = vmatpush.msrb.mxu0 %v1603_v20 }
 0x509   :  { %1625 = vmatpush.msrb.mxu0 %v1602_v5 }
 0x50b   :  { %1626 = vmatpush.msrb.mxu0 %v1601_v9 }
 0x50d   :  { %1627 = vmatpush.msrb.mxu0 %v1600_v1 }
 0x50f   :  { %1628 = vmatpush.msrb.mxu0 %v1599_v59 }
 0x511   :  { %1629 = vmatpush.msrb.mxu0 %v1598_v33 }
 0x513   :  { %1630 = vmatpush.msrb.mxu0 %v1597_v11 }
 0x515   :  { %1631 = vmatpush.msrb.mxu0 %v1596_v37 }
 0x57e   :  { %v1466_v56 = vpop.f32.mrf.mxu0  ;;  %v1486_v61 = vpop.f32.mrf.mxu1 }
 0x57f   :  { %v1529_v4 = vadd.f32 %v1466_v56, %v3326_v62  ;;  %v1530_v63 = vadd.f32 %v1486_v61, %v3327_v7  ;;  %v1717_v56 = vld [vmem:[#allocation3] ss:$0 sm:$0xff] }
 0x581   :  { %v1707_v6 = vmul.f32 -1.442695, %v1529_v4  ;;  %v1708_v52 = vmul.f32 -1.442695, %v1530_v63 }
 0x583   :  { %1830 = vpow2.f32 %v1707_v6 }
 0x584   :  { %1832 = vpow2.f32 %v1708_v52 }
 0x585   :  { %v1526_v58 = vpop.f32.mrf.mxu3  ;;  %v1506_v29 = vpop.f32.mrf.mxu2 }
 0x586   :  { %v1532_v13 = vadd.f32 %v1526_v58, %v3328_v12  ;;  %v1531_v31 = vadd.f32 %v1506_v29, %v3329_v23 }
 0x588   :  { %v1709_v26 = vmul.f32 -1.442695, %v1532_v13 }
 0x589   :  { %v1831_v24 = vpop.eup %1830 }
 0x58a   :  { %v1833_v14 = vpop.eup %1832  ;;  %v1536_v15 = vadd.f32 1.0, %v1831_v24  ;;  %1834 = vpow2.f32 %v1709_v26 }
 0x58b   :  { %v1555_v21 = vadd.f32 1.0, %v1833_v14 }
 0x58c   :  { %1836 = vrcp.f32 %v1536_v15  ;;  %v1548_v32 = vand.u32 2147483648, %v1536_v15  ;;  %v1546_v39 = vand.u32 2147483647, %v1536_v15  ;;  %vm1542_vm8 = vweird.f32 %v1536_v15 }
 0x58d   :  { %1838 = vrcp.f32 %v1555_v21  ;;  %v1567_v38 = vand.u32 2147483648, %v1555_v21  ;;  %v1565_v36 = vand.u32 2147483647, %v1555_v21  ;;  %vm1561_vm9 = vweird.f32 %v1555_v21 }
 0x58e   :  { %v1549_v55 = vor.u32 1.1754944e-38, %v1548_v32  ;;  %vm1547_vm12 = vcmp.eq.f32.partialorder %v1546_v39, 8.507059e+37 }
 0x58f   :  { %v1568_v44 = vor.u32 1.1754944e-38, %v1567_v38  ;;  %vm1566_vm13 = vcmp.eq.f32.partialorder %v1565_v36, 8.507059e+37 }
 0x590   :  { %v1835_v17 = vpop.eup %1834 }
 0x591   :  { %v1575_v28 = vadd.f32 1.0, %v1835_v17 }
 0x592   :  { %v1837_v22 = vpop.eup %1836 }
 0x593   :  { %v1839_v30 = vpop.eup %1838  ;;  %v1538_v18 = vmul.f32 %v1837_v22, %v1536_v15  ;;  %1840 = vrcp.f32 %v1575_v28  ;;  %vm1543_vm6 = vweird.f32 %v1837_v22  ;;  %v1587_v60 = vand.u32 2147483648, %v1575_v28 }
 0x594   :  { %v1557_v41 = vmul.f32 %v1839_v30, %v1555_v21  ;;  %1842 = vtanh.f32 %v1531_v31  ;;  %vm1562_vm7 = vweird.f32 %v1839_v30  ;;  %vm1544_vm10 = vmor %vm1542_vm8, %vm1543_vm6  ;;  %vm1581_vm15 = vweird.f32 %v1575_v28 }
 0x595   :  { %v1539_v19 = vsub.f32 1.0, %v1538_v18  ;;  %vm1563_vm11 = vmor %vm1561_vm9, %vm1562_vm7  ;;  %v1585_v2 = vand.u32 2147483647, %v1575_v28  ;;  %v1588_v46 = vor.u32 1.1754944e-38, %v1587_v60 }
 0x596   :  { %v1558_v34 = vsub.f32 1.0, %v1557_v41 }
 0x597   :  { %v1540_v40 = vmul.f32 %v1837_v22, %v1539_v19  ;;  %vm1586_vm1 = vcmp.eq.f32.partialorder %v1585_v2, 8.507059e+37 }
 0x598   :  { %v1559_v27 = vmul.f32 %v1839_v30, %v1558_v34 }
 0x599   :  { %v1841_v16 = vpop.eup %1840  ;;  %v1541_v25 = vadd.f32 %v1837_v22, %v1540_v40 }
 0x59a   :  { %v1560_v42 = vadd.f32 %v1839_v30, %v1559_v27  ;;  %v1577_v43 = vmul.f32 %v1841_v16, %v1575_v28  ;;  %v1843_v48 = vpop.eup %1842  ;;  %vm1582_vm14 = vweird.f32 %v1841_v16 }
 0x59b   :  { %v1545_v47 = vsel %vm1544_vm10, %v1837_v22, %v1541_v25  ;;  %vm1583_vm0 = vmor %vm1581_vm15, %vm1582_vm14 }
 0x59c   :  { %v1550_v49 = vsel %vm1547_vm12, %v1549_v55, %v1545_v47  ;;  %v1564_v50 = vsel %vm1563_vm11, %v1839_v30, %v1560_v42  ;;  %v1578_v51 = vsub.f32 1.0, %v1577_v43 }
 0x59d   :  { %v1569_v53 = vsel %vm1566_vm13, %v1568_v44, %v1564_v50  ;;  %v1592_v10 = vmul.f32 %v1843_v48, %v1550_v49 }
 0x59e   :  { %v1591_v57 = vmul.f32 %v1569_v53, %v2963_v45  ;;  %v1579_v54 = vmul.f32 %v1841_v16, %v1578_v51 }
 0x5a0   :  { %v1593_v3 = vadd.f32 %v1592_v10, %v1591_v57  ;;  %v1580_v8 = vadd.f32 %v1841_v16, %v1579_v54 }
 0x5a2   :  { %1844 = vtanh.f32 %v1593_v3  ;;  %v1584_v0 = vsel %vm1583_vm0, %v1841_v16, %v1580_v8 }
 0x5a3   :  { %v1589_v20 = vsel %vm1586_vm1, %v1588_v46, %v1584_v0 }
 0x5a8   :  { %v1845_v35 = vpop.eup %1844 }
 0x5a9   :  { %v1595_v5 = vmul.f32 %v1845_v35, %v1589_v20 }
 0x5ab   :  { %1632 = vmatmul.f32.vlgmr.msrb.gmra.mxu0 %v1595_v5 }
 0x628   :  { %v1633_v61 = vpop.f32.mrf.mxu0 }
 0x629   :  { %v1634_v45 = vadd.f32 %v1717_v56, %v1633_v61 }
 0x62b   :  { %1637 = vst.msk [vmem:[%s3028_s6] sm:$0xff] %vm1636_vm2, %v1634_v45 }
 0x62c   :  { %1642 = vsyncpa [#allocation5], 1 }

</bundles_post_ra>
